<compile_context>
chip_gen: v7x
topology: tpu7x:2x2x1
jax: 0.10.0
libtpu: 0.0.40
codegen_flags: <defaults>
</compile_context>

<pallas_src>
import functools

import jax
import jax.numpy as jnp
from jax.experimental import pallas as pl
from jax.experimental.pallas import tpu as pltpu

NEG_SLOPE = 2.5e-1  # LeakyReLU negative slope from the PyTorch module
LANE = 128          # TPU lane width: output halves are padded to this for lane-dense stores


def _leaky_relu(x):
    return jnp.where(x >= 0, x, NEG_SLOPE * x)


def _round_up(a, m):
    return ((a + m - 1) // m) * m


# -----------------------------------------------------------------------------
# Kernel: one grid step = one (modality, batch-tile).
# -----------------------------------------------------------------------------
def fused_rnp_kernel(x_ref, w1_ref, w2_ref, w3_ref, b_ref,
                     rp_ref, unc_ref, *, d1, d2, half):
    x = x_ref[...]                                      # (TB, in_len)

    b1 = b_ref[:, 0:d1]                                 # (1, d1)        layer-1 bias (both nets)
    b2 = b_ref[:, d1:d1 + d2]                           # (1, d2)        layer-2 bias
    b3 = b_ref[:, d1 + d2:d1 + d2 + 2 * half]           # (1, 2*half)    lane-padded layer-3 bias

    h = _leaky_relu(jnp.dot(x, w1_ref[...], preferred_element_type=jnp.float32) + b1)
    h = _leaky_relu(jnp.dot(h, w2_ref[...], preferred_element_type=jnp.float32) + b2)
    rp = jnp.dot(h, w3_ref[...], preferred_element_type=jnp.float32) + b3   # (TB, 2*half)

    r = rp[:, 0:half]                                   # random slab,     lanes [0:128)
    p = rp[:, half:2 * half]                            # prediction slab, lanes [128:256)
    diff = p - r                                        # pure VPU: both slabs 128-lane aligned

    rp_ref[...] = rp                                    # lane-dense [random | predicted]
    unc_ref[...] = diff * diff * 0.5                    # (p - r)^2 / 2, lane-dense 128-wide


# -----------------------------------------------------------------------------
# Parameter packing: fuse the two MLPs of one RNP module (lane-padded layer 3).
# -----------------------------------------------------------------------------
def _pack_modality(random_params, prediction_params):
    (rw1, rb1), (rw2, rb2), (rw3, rb3) = random_params
    (pw1, pb1), (pw2, pb2), (pw3, pb3) = prediction_params
    h1, h2, od = rw1.shape[1], rw2.shape[1], rw3.shape[1]
    d1, d2 = 2 * h1, 2 * h2
    half = max(LANE, _round_up(od, LANE))               # lane-padded width of each output half

    w1 = jnp.concatenate([rw1, pw1], axis=1).astype(jnp.float32)        # (in, d1)

    w2 = jnp.zeros((d1, d2), jnp.float32)
    w2 = w2.at[:h1, :h2].set(rw2).at[h1:, h2:].set(pw2)                 # block-diag (d1, d2)

    w3 = jnp.zeros((d2, 2 * half), jnp.float32)                         # lane-padded block-diag
    w3 = w3.at[:h2, 0:od].set(rw3).at[h2:, half:half + od].set(pw3)

    b3 = jnp.zeros((2 * half,), jnp.float32)
    b3 = b3.at[0:od].set(rb3.reshape(-1)).at[half:half + od].set(pb3.reshape(-1))

    bias = jnp.concatenate([rb1.reshape(-1), pb1.reshape(-1),
                            rb2.reshape(-1), pb2.reshape(-1),
                            b3]).reshape(1, -1)
    return w1, w2, w3, bias, half


# -----------------------------------------------------------------------------
# Wrapper: MultiModalRNPModel_256 forward.
# -----------------------------------------------------------------------------
def multimodal_rnp_forward(xs, modality_params, *, batch_tile=256):
    """xs: pre-stacked (M, B, input_length) array (preferred, no extra HBM copy) or a list
    of M arrays of shape (B, input_length).  modality_params: list of
    (random_params, prediction_params), each [(W1,b1),(W2,b2),(W3,b3)] with W stored (in, out).
    Returns (unc_1, rand_1, pred_1, unc_2, rand_2, pred_2, unc_3, rand_3, pred_3)."""
    if isinstance(xs, (list, tuple)):
        X = jnp.stack(xs)                              # fallback path (copies)
    else:
        X = xs                                         # pre-stacked: no stack copy
    num_mod, B, in_len = X.shape

    packs = [_pack_modality(rp, pp) for (rp, pp) in modality_params]
    half = packs[0][4]
    W1 = jnp.stack([p[0] for p in packs])              # (M, in, d1)
    W2 = jnp.stack([p[1] for p in packs])              # (M, d1, d2)
    W3 = jnp.stack([p[2] for p in packs])              # (M, d2, 2*half)
    BIAS = jnp.stack([p[3] for p in packs])            # (M, 1, d1+d2+2*half)
    d1, d2, d3 = W1.shape[2], W2.shape[2], W3.shape[2]
    bias_w = BIAS.shape[2]
    out_dim = modality_params[0][0][2][0].shape[1]     # random net W3 out-features

    # Batch tiling: large (>=256-row) tiles so each MXU pass is full; pad only if needed.
    tb = max(8, min(_round_up(batch_tile, 8), _round_up(B, 8)))
    Bp = _round_up(B, tb)
    if Bp != B:
        X = jnp.pad(X, ((0, 0), (0, Bp - B), (0, 0)))

    grid = (num_mod, Bp // tb)  # modality outer -> weights stay resident across batch tiles

    flops = 2 * num_mod * Bp * (in_len * d1 + d1 * d2 + d2 * d3)
    bytes_accessed = 4 * (num_mod * Bp * in_len + W1.size + W2.size + W3.size + BIAS.size
                          + num_mod * Bp * (d3 + half))

    kernel = functools.partial(fused_rnp_kernel, d1=d1, d2=d2, half=half)

    rp_out, unc_out = pl.pallas_call(
        kernel,
        grid=grid,
        in_specs=[
            pl.BlockSpec((None, tb, in_len), lambda m, i: (m, i, 0)),    # x tile
            pl.BlockSpec((None, in_len, d1), lambda m, i: (m, 0, 0)),    # fused W1
            pl.BlockSpec((None, d1, d2), lambda m, i: (m, 0, 0)),        # block-diag W2
            pl.BlockSpec((None, d2, d3), lambda m, i: (m, 0, 0)),        # lane-padded W3
            pl.BlockSpec((None, 1, bias_w), lambda m, i: (m, 0, 0)),     # packed biases
        ],
        out_specs=(
            pl.BlockSpec((None, tb, d3), lambda m, i: (m, i, 0)),        # [random | predicted]
            pl.BlockSpec((None, tb, half), lambda m, i: (m, i, 0)),      # uncertainty slab
        ),
        out_shape=(
            jax.ShapeDtypeStruct((num_mod, Bp, d3), jnp.float32),
            jax.ShapeDtypeStruct((num_mod, Bp, half), jnp.float32),
        ),
        compiler_params=pltpu.CompilerParams(
            dimension_semantics=("parallel", "parallel")),
        cost_estimate=pl.CostEstimate(flops=flops, transcendentals=0,
                                      bytes_accessed=bytes_accessed),
    )(X, W1, W2, W3, BIAS)

    outs = []
    for m in range(num_mod):
        r = rp_out[m, :B, 0:out_dim]
        p = rp_out[m, :B, half:half + out_dim]
        unc = unc_out[m, :B, 0:out_dim]
        outs += [unc, r, p]
    return tuple(outs)


# -----------------------------------------------------------------------------
# Deterministic parameter construction (orthogonal init, zero bias), matching the
# PyTorch shapes: input_length -> 128 -> 64 -> output_dim.
# -----------------------------------------------------------------------------
def _calculate_gain_leaky_relu(neg_slope):
    return jnp.sqrt(2.0 / (1.0 + neg_slope ** 2))


def _orthogonal(key, out_f, in_f, gain):
    """Orthogonal matrix of shape (out_f, in_f), like torch.nn.init.orthogonal_."""
    big, small = max(out_f, in_f), min(out_f, in_f)
    a = jax.random.normal(key, (big, small), dtype=jnp.float32)
    q, r = jnp.linalg.qr(a)
    q = q * jnp.sign(jnp.diagonal(r))[None, :]
    if out_f < in_f:
        q = q.T
    return (gain * q[:out_f, :in_f]).astype(jnp.float32)


def make_mlp_params(key, input_length, hidden1, hidden2, output_dim):
    gain = _calculate_gain_leaky_relu(NEG_SLOPE)
    k1, k2, k3 = jax.random.split(key, 3)
    # PyTorch Linear weight is (out, in); we store transposed (in, out) for x @ W.
    w1 = _orthogonal(k1, hidden1, input_length, gain).T
    w2 = _orthogonal(k2, hidden2, hidden1, gain).T
    w3 = _orthogonal(k3, output_dim, hidden2, gain).T
    b1 = jnp.zeros((1, hidden1), jnp.float32)
    b2 = jnp.zeros((1, hidden2), jnp.float32)
    b3 = jnp.zeros((1, output_dim), jnp.float32)
    return [(w1, b1), (w2, b2), (w3, b3)]


def reference_forward(xs, modality_params):
    """Pure-JAX reference of the PyTorch MultiModalRNPModel_256 forward."""
    def mlp(x, params):
        (w1, b1), (w2, b2), (w3, b3) = params
        h = jax.nn.leaky_relu(x @ w1 + b1, NEG_SLOPE)
        h = jax.nn.leaky_relu(h @ w2 + b2, NEG_SLOPE)
        return h @ w3 + b3

    outs = []
    for x, (rp, pp) in zip(xs, modality_params):
        r = mlp(x, rp)
        p = mlp(x, pp)
        outs += [(p - r) ** 2 / 2, r, p]
    return tuple(outs)


if __name__ == "__main__":
    input_length = 256
    output_dim = 2
    batch = 256
    num_modalities = 3

    root = jax.random.PRNGKey(0)
    keys = jax.random.split(root, 2 * num_modalities + 1)

    modality_params = []
    for m in range(num_modalities):
        rnd = make_mlp_params(keys[2 * m], input_length, 128, 64, output_dim)
        prd = make_mlp_params(keys[2 * m + 1], input_length, 128, 64, output_dim)
        modality_params.append((rnd, prd))

    # Pre-stacked (M, B, in_len) input -> no stack/pad copy before the kernel.
    X = jax.random.normal(keys[-1], (num_modalities, batch, input_length), dtype=jnp.float32)

    outs = multimodal_rnp_forward(X, modality_params, batch_tile=256)
    jax.block_until_ready(outs)

    refs = reference_forward([X[m] for m in range(num_modalities)], modality_params)
    for got, want in zip(outs, refs):
        assert got.shape == want.shape, (got.shape, want.shape)
        max_err = float(jnp.max(jnp.abs(got - want)))
        assert jnp.allclose(got, want, atol=1e-3, rtol=1e-3), max_err

    print("KERNEL_OK")
</pallas_src>

<mosaic_0001>
module attributes {stable_mosaic.version = 11 : i64} {
  func.func @fused_rnp_kernel(%arg0: i32, %arg1: i32, %arg2: memref<1x256x256xf32, #tpu.memory_space<vmem>>, %arg3: memref<1x256x256xf32, #tpu.memory_space<vmem>>, %arg4: memref<1x256x128xf32, #tpu.memory_space<vmem>>, %arg5: memref<1x128x256xf32, #tpu.memory_space<vmem>>, %arg6: memref<1x1x640xf32, #tpu.memory_space<vmem>>, %arg7: memref<1x256x256xf32, #tpu.memory_space<vmem>>, %arg8: memref<1x256x128xf32, #tpu.memory_space<vmem>>) attributes {dimension_semantics = [#tpu.dimension_semantics<parallel>, #tpu.dimension_semantics<parallel>], iteration_bounds = array<i64: 3, 1>, scalar_prefetch = 0 : i64, scratch_operands = 0 : i64, tpu.core_type = #tpu.core_type<tc>, window_params = [{transform_indices = @transform_0, window_bounds = array<i64: 1, 256, 256>}, {transform_indices = @transform_1, window_bounds = array<i64: 1, 256, 256>}, {transform_indices = @transform_2, window_bounds = array<i64: 1, 256, 128>}, {transform_indices = @transform_3, window_bounds = array<i64: 1, 128, 256>}, {transform_indices = @transform_4, window_bounds = array<i64: 1, 1, 640>}, {transform_indices = @transform_5, window_bounds = array<i64: 1, 256, 256>}, {transform_indices = @transform_6, window_bounds = array<i64: 1, 256, 128>}]} {
    %c0 = arith.constant 0 : index
    %c0_0 = arith.constant 0 : index
    %c0_1 = arith.constant 0 : index
    %0 = vector.load %arg2[%c0, %c0_0, %c0_1] : memref<1x256x256xf32, #tpu.memory_space<vmem>>, vector<1x256x256xf32>
    %1 = vector.shape_cast %0 : vector<1x256x256xf32> to vector<256x256xf32>
    %c0_2 = arith.constant 0 : index
    %c0_3 = arith.constant 0 : index
    %c0_4 = arith.constant 0 : index
    %2 = vector.load %arg6[%c0_2, %c0_3, %c0_4] : memref<1x1x640xf32, #tpu.memory_space<vmem>>, vector<1x1x256xf32>
    %3 = vector.shape_cast %2 : vector<1x1x256xf32> to vector<1x256xf32>
    %c0_5 = arith.constant 0 : index
    %c0_6 = arith.constant 0 : index
    %c256 = arith.constant 256 : index
    %4 = vector.load %arg6[%c0_5, %c0_6, %c256] : memref<1x1x640xf32, #tpu.memory_space<vmem>>, vector<1x1x128xf32>
    %5 = vector.shape_cast %4 : vector<1x1x128xf32> to vector<1x128xf32>
    %c0_7 = arith.constant 0 : index
    %c0_8 = arith.constant 0 : index
    %c384 = arith.constant 384 : index
    %6 = vector.load %arg6[%c0_7, %c0_8, %c384] : memref<1x1x640xf32, #tpu.memory_space<vmem>>, vector<1x1x256xf32>
    %7 = vector.shape_cast %6 : vector<1x1x256xf32> to vector<1x256xf32>
    %c0_9 = arith.constant 0 : index
    %c0_10 = arith.constant 0 : index
    %c0_11 = arith.constant 0 : index
    %8 = vector.load %arg3[%c0_9, %c0_10, %c0_11] : memref<1x256x256xf32, #tpu.memory_space<vmem>>, vector<1x256x256xf32>
    %9 = vector.shape_cast %8 : vector<1x256x256xf32> to vector<256x256xf32>
    %cst = arith.constant dense<0.000000e+00> : vector<256x256xf32>
    %10 = tpu.matmul %1, %9, %cst {dimension_numbers = #tpu.dot_dimension_numbers<[1], [0], [0], [1], [0, 0, 1, 1], [], []>} : vector<256x256xf32>, vector<256x256xf32>, vector<256x256xf32> -> vector<256x256xf32>
    %11 = vector.broadcast %3 : vector<1x256xf32> to vector<256x256xf32>
    %12 = arith.addf %10, %11 : vector<256x256xf32>
    %cst_12 = arith.constant 0.000000e+00 : f32
    %13 = vector.broadcast %cst_12 : f32 to vector<256x256xf32>
    %14 = arith.cmpf oge, %12, %13 : vector<256x256xf32>
    %cst_13 = arith.constant 2.500000e-01 : f32
    %15 = vector.broadcast %cst_13 : f32 to vector<256x256xf32>
    %16 = arith.mulf %15, %12 : vector<256x256xf32>
    %17 = arith.select %14, %12, %16 : vector<256x256xi1>, vector<256x256xf32>
    %c0_14 = arith.constant 0 : index
    %c0_15 = arith.constant 0 : index
    %c0_16 = arith.constant 0 : index
    %18 = vector.load %arg4[%c0_14, %c0_15, %c0_16] : memref<1x256x128xf32, #tpu.memory_space<vmem>>, vector<1x256x128xf32>
    %19 = vector.shape_cast %18 : vector<1x256x128xf32> to vector<256x128xf32>
    %cst_17 = arith.constant dense<0.000000e+00> : vector<256x128xf32>
    %20 = tpu.matmul %17, %19, %cst_17 {dimension_numbers = #tpu.dot_dimension_numbers<[1], [0], [0], [1], [0, 0, 1, 1], [], []>} : vector<256x256xf32>, vector<256x128xf32>, vector<256x128xf32> -> vector<256x128xf32>
    %21 = vector.broadcast %5 : vector<1x128xf32> to vector<256x128xf32>
    %22 = arith.addf %20, %21 : vector<256x128xf32>
    %cst_18 = arith.constant 0.000000e+00 : f32
    %23 = vector.broadcast %cst_18 : f32 to vector<256x128xf32>
    %24 = arith.cmpf oge, %22, %23 : vector<256x128xf32>
    %cst_19 = arith.constant 2.500000e-01 : f32
    %25 = vector.broadcast %cst_19 : f32 to vector<256x128xf32>
    %26 = arith.mulf %25, %22 : vector<256x128xf32>
    %27 = arith.select %24, %22, %26 : vector<256x128xi1>, vector<256x128xf32>
    %c0_20 = arith.constant 0 : index
    %c0_21 = arith.constant 0 : index
    %c0_22 = arith.constant 0 : index
    %28 = vector.load %arg5[%c0_20, %c0_21, %c0_22] : memref<1x128x256xf32, #tpu.memory_space<vmem>>, vector<1x128x256xf32>
    %29 = vector.shape_cast %28 : vector<1x128x256xf32> to vector<128x256xf32>
    %cst_23 = arith.constant dense<0.000000e+00> : vector<256x256xf32>
    %30 = tpu.matmul %27, %29, %cst_23 {dimension_numbers = #tpu.dot_dimension_numbers<[1], [0], [0], [1], [0, 0, 1, 1], [], []>} : vector<256x128xf32>, vector<128x256xf32>, vector<256x256xf32> -> vector<256x256xf32>
    %31 = vector.broadcast %7 : vector<1x256xf32> to vector<256x256xf32>
    %32 = arith.addf %30, %31 : vector<256x256xf32>
    %33 = vector.extract_strided_slice %32 {offsets = [0, 0], sizes = [256, 128], strides = [1, 1]} : vector<256x256xf32> to vector<256x128xf32>
    %34 = vector.extract_strided_slice %32 {offsets = [0, 128], sizes = [256, 128], strides = [1, 1]} : vector<256x256xf32> to vector<256x128xf32>
    %35 = arith.subf %34, %33 : vector<256x128xf32>
    %c0_24 = arith.constant 0 : index
    %c0_25 = arith.constant 0 : index
    %c0_26 = arith.constant 0 : index
    %36 = vector.load %arg7[%c0_24, %c0_25, %c0_26] : memref<1x256x256xf32, #tpu.memory_space<vmem>>, vector<1x256x256xf32>
    %37 = vector.shape_cast %36 : vector<1x256x256xf32> to vector<256x256xf32>
    %38 = vector.shape_cast %32 : vector<256x256xf32> to vector<1x256x256xf32>
    tpu.vector_store %arg7[%c0_24, %c0_25, %c0_26], %38 {strides = array<i32>} : memref<1x256x256xf32, #tpu.memory_space<vmem>>, vector<1x256x256xf32>,
    %39 = arith.mulf %35, %35 : vector<256x128xf32>
    %cst_27 = arith.constant 5.000000e-01 : f32
    %40 = vector.broadcast %cst_27 : f32 to vector<256x128xf32>
    %41 = arith.mulf %39, %40 : vector<256x128xf32>
    %c0_28 = arith.constant 0 : index
    %c0_29 = arith.constant 0 : index
    %c0_30 = arith.constant 0 : index
    %42 = vector.load %arg8[%c0_28, %c0_29, %c0_30] : memref<1x256x128xf32, #tpu.memory_space<vmem>>, vector<1x256x128xf32>
    %43 = vector.shape_cast %42 : vector<1x256x128xf32> to vector<256x128xf32>
    %44 = vector.shape_cast %41 : vector<256x128xf32> to vector<1x256x128xf32>
    tpu.vector_store %arg8[%c0_28, %c0_29, %c0_30], %44 {strides = array<i32>} : memref<1x256x128xf32, #tpu.memory_space<vmem>>, vector<1x256x128xf32>,
    return
  }
  func.func @transform_0(%arg0: i32, %arg1: i32) -> (i32, i32, i32) {
    %c0_i32 = arith.constant 0 : i32
    %c0_i32_0 = arith.constant 0 : i32
    return %arg0, %arg1, %c0_i32 : i32, i32, i32
  }
  func.func @transform_1(%arg0: i32, %arg1: i32) -> (i32, i32, i32) {
    %c0_i32 = arith.constant 0 : i32
    %c0_i32_0 = arith.constant 0 : i32
    %c0_i32_1 = arith.constant 0 : i32
    return %arg0, %c0_i32, %c0_i32_0 : i32, i32, i32
  }
  func.func @transform_2(%arg0: i32, %arg1: i32) -> (i32, i32, i32) {
    %c0_i32 = arith.constant 0 : i32
    %c0_i32_0 = arith.constant 0 : i32
    %c0_i32_1 = arith.constant 0 : i32
    return %arg0, %c0_i32, %c0_i32_0 : i32, i32, i32
  }
  func.func @transform_3(%arg0: i32, %arg1: i32) -> (i32, i32, i32) {
    %c0_i32 = arith.constant 0 : i32
    %c0_i32_0 = arith.constant 0 : i32
    %c0_i32_1 = arith.constant 0 : i32
    return %arg0, %c0_i32, %c0_i32_0 : i32, i32, i32
  }
  func.func @transform_4(%arg0: i32, %arg1: i32) -> (i32, i32, i32) {
    %c0_i32 = arith.constant 0 : i32
    %c0_i32_0 = arith.constant 0 : i32
    %c0_i32_1 = arith.constant 0 : i32
    return %arg0, %c0_i32, %c0_i32_0 : i32, i32, i32
  }
  func.func @transform_5(%arg0: i32, %arg1: i32) -> (i32, i32, i32) {
    %c0_i32 = arith.constant 0 : i32
    %c0_i32_0 = arith.constant 0 : i32
    return %arg0, %arg1, %c0_i32 : i32, i32, i32
  }
  func.func @transform_6(%arg0: i32, %arg1: i32) -> (i32, i32, i32) {
    %c0_i32 = arith.constant 0 : i32
    %c0_i32_0 = arith.constant 0 : i32
    return %arg0, %arg1, %c0_i32 : i32, i32, i32
  }
}

</mosaic_0001>

<bundles_post_ra>
// kernel: tpu_custom_call.1
= control target key start
LH: loop header
LB: loop body
LE: loop exit
PB: predicated region body
PF: predicated region fallthrough
CT: control target
= control target key end

     0   :  { %s3790_s0 = inlined_call_operand.hbm [shape: f32[3,256,256], index: 0, kind: input, shape index: {}]   ;;  %s3791_s1 = inlined_call_operand.hbm [shape: f32[3,256,256], index: 1, kind: input, shape index: {}]   ;;  %s3792_s2 = inlined_call_operand.hbm [shape: f32[3,256,128], index: 2, kind: input, shape index: {}]   ;;  %s3793_s3 = inlined_call_operand.hbm [shape: f32[3,128,256], index: 3, kind: input, shape index: {}]   ;;  %s3794_s4 = inlined_call_operand.vmem [shape: f32[3,1,640], index: 4, kind: input, shape index: {}]   ;;  %s3795_s5 = inlined_call_operand.hbm [shape: f32[3,256,256], index: 5, kind: output, shape index: {0}]   ;;  %s3796_s6 = inlined_call_operand.hbm [shape: f32[3,256,128], index: 6, kind: output, shape index: {1}]  }
   0x1   :  { %3810 = sst [smem:[#allocation23_spill]] %s3790_s0 }
   0x2   :  { %3811 = sst [smem:[#allocation24_spill]] %s3791_s1 }
   0x3   :  { %3812 = sst [smem:[#allocation25_spill]] %s3792_s2 }
   0x4   :  { %12 = vsyncpa [#allocation3], 0 }
   0x5   :  { %14 = vsyncpa [#allocation3 + $0x1], 0 }
   0x6   :  { %15 = vsyncpa [#allocation6], 0 }
   0x7   :  { %17 = vsyncpa [#allocation6 + $0x1], 0 }
   0x8   :  { %18 = vsyncpa [#allocation9], 0 }
   0x9   :  { %20 = vsyncpa [#allocation9 + $0x1], 0 }
   0xa   :  { %21 = vsyncpa [#allocation4], 0 }
   0xb   :  { %23 = vsyncpa [#allocation4 + $0x1], 0 }
   0xc   :  { %24 = vsyncpa [#allocation12], 0 }
   0xd   :  { %26 = vsyncpa [#allocation12 + $0x1], 0  ;;  %s2723_s21 = smov 0   ;;  %s2725_s22 = smov 0  }
   0xe   :  { %s2727_s23 = smov 0   ;;  %s2729_s24 = smov 0  }
   0xf   :  { %s2731_s25 = smov 0   ;;  %s2733_s26 = smov 0  }
  0x10 LB: > { %3813 = sst [smem:[#allocation18_spill]] %s2650_s21  ;;  %s2754_s27 = sadd.s32 4294967295, %s2670_s26   ;;  %s2670_s26 = sphi %s2733_s26, %s32_s26   ;;  %s2666_s25 = sphi %s2731_s25, %s3847_s25   ;;  %s2662_s24 = sphi %s2729_s24, %s3846_s24   ;;  %s2658_s23 = sphi %s2727_s23, %s3842_s23   ;;  %s2654_s22 = sphi %s2725_s22, %s3845_s22   ;;  %s2650_s21 = sphi %s2723_s21, %s3844_s21  }
  0x11   : > { %3814 = sst [smem:[#allocation19_spill]] %s2658_s23  ;;  %s2122_s28 = sadd.s32 4294967294, %s2670_s26  }
  0x12   : > { %s44_s29 = sadd.s32 1, %s2666_s25  ;;  %s53_s30 = sadd.s32 1, %s2658_s23 }
  0x13   : > { %p46_p0 = scmp.ge.s32.totalorder %s44_s29, 3  ;;  %p60_p1 = scmp.ne.s32.totalorder %s2658_s23, %s2654_s22 }
  0x14   : > { %p61_p2 = scmp.eq.s32.totalorder %s2670_s26, 0  ;;  %p66_p3 = scmp.ne.s32.totalorder %s2654_s22, %s2650_s21 }
  0x15   : > { %s3849_s29 = smov (%p46_p0, %s44_s29), 0  ;;  %p67_p5 = scmp.eq.s32.totalorder %s2754_s27, 0 }
  0x16   : > { %3815 = sst [smem:[#allocation20_spill]] %s3849_s29  ;;  %p2766_p4 = por %p61_p2, %p60_p1 }
  0x17   : > { %s48_s8 = ssub.s32 %s2666_s25, %s3849_s29  ;;  %p196_p6 = scmp.eq.s32.totalorder %s2754_s27, 2 }
  0x18   : > { %p51_p7 = scmp.eq.s32.totalorder %s48_s8, 0  ;;  %p2774_p8 = por %p67_p5, %p66_p3 }
  0x19   : > { %p2778_p9 = por %p196_p6, %p60_p1  ;;  %p202_p10 = scmp.eq.s32.totalorder %s2122_s28, 2 }
  0x1a   : > { %s3817_s9 = scalar_select %p2774_p8, 1, 0 }
  0x1b   : > { %s3818_s10 = scalar_select %p2778_p9, 1, 0 }
  0x1c   : > { %s2783_s11 = scalar_select %p51_p7, %s2658_s23, %s53_s30  }
  0x1d   : > { %p2785_p11 = por %p202_p10, %p66_p3  ;;  %p2368_p12 = scmp.lt.s32.totalorder %s2670_s26, 3 }
  0x1e   : > { %3819 = sst [smem:[#allocation21_spill]] %s2783_s11  ;;  %s2791_s13 = sand.u32 1, %s2658_s23  }
  0x1f   : > { %s3820_s12 = scalar_select %p2785_p11, 1, 0 }
  0x20   : > { %s3797_s14 = sshll.u32 %s2791_s13, 9  ;;  %s3798_s15 = sshll.u32 %s2666_s25, 13 }
  0x21   : > { %3821 = sst [smem:[#allocation22_spill]] %s3820_s12  ;;  %p2797_p13 = pnand %p2368_p12, %p2766_p4 }
  0x22   : > { %s274_s17 = sand.u32 1, %s2670_s26   ;;  %s3823_s1 = sld [smem:[#allocation24_spill]] }
  0x23   : > { %s278_s28 = scalar_lea.vmem [#allocation5], %s3797_s14  ;;  %s2815_s7 = scalar_lea.sflag [#allocation6], %s274_s17 }
  0x24   : > { %s285_s30 = sshll.u32 %s278_s28, 4  ;;  %p2821_p3 = pneg %p2797_p13  ;;  %s2812_s30 = int_to_ptr.vmem [resolvable:$true] %s285_s30 }
  0x28   : > { %s2807_s20 = scalar_lea.hbm %s3823_s1, %s3798_s15  ;;  %s2433_s28 = scalar_lea.hbm %s3823_s1, 24576 }
  0x29   : > { %s2428_s8 = scalar_lea.hbm %s2807_s20, 8192  ;;  %p2434_p6 = scmp.lt.u32.totalorder %s2807_s20, %s3823_s1 }
  0x2a   : > { %p2429_p2 = scmp.ne.s32.totalorder %s2807_s20, %s2428_s8  ;;  %p2435_p7 = scmp.lt.u32.totalorder %s2433_s28, %s2428_s8 }
  0x2b   : > { %p2437_p12 = scmp.lt.u32.totalorder %s2428_s8, %s2807_s20 }
  0x2c   : > { %p2431_p4 = pnand %p2821_p3, %p2429_p2  ;;  %p2436_p10 = por %p2435_p7, %p2434_p6 }
  0x2e   : > { %p2432_p5 = pneg %p2431_p4  ;;  %p2438_p0 = por %p2437_p12, %p2436_p10 }
  0x30   : > { %p2439_p1 = pnand %p2438_p0, %p2432_p5 }
  0x32   : > { %2442 = shalt.err (!%p2439_p1)
}
  0x33   : > { %s2443_s17 = scalar_lea.vmem %s2812_s30, 8192  ;;  %s2672_s14 = smov [#allocation5]  }
  0x34   : > { %p2444_p2 = scmp.ne.s32.totalorder %s2812_s30, %s2443_s17  ;;  %s2448_s19 = sshll.u32 %s2672_s14, 4  ;;  %s2449_s19 = int_to_ptr.vmem [resolvable:$false] %s2448_s19 }
  0x35   : > { %s2450_s29 = scalar_lea.vmem %s2449_s19, 16384  ;;  %p2451_p9 = scmp.lt.s32.totalorder %s2812_s30, %s2449_s19 }
  0x36   : > { %p2446_p4 = pnand %p2444_p2, %p2821_p3  ;;  %p2452_p8 = scmp.lt.s32.totalorder %s2450_s29, %s2443_s17 }
  0x38   : > { %p2447_p11 = pneg %p2446_p4  ;;  %p2453_p6 = por %p2452_p8, %p2451_p9 }
  0x3a   : > { %p2454_p7 = pnand %p2453_p6, %p2447_p11 }
  0x3c   : > { %2457 = shalt.err (!%p2454_p7)
}
  0x3d   : > { %s3803_s15 = smov 256   ;;  %s3805_s8 = smov 16  }
  0x3e   : > { %2354 = dma.hbm_to_vmem [thread:$0]  (!%p2797_p13), %s2807_s20, 8192, %s2812_s30, %s2815_s7, %s3803_s15, %s3803_s15, %s3805_s8  }
  0x3f   : > { %p3825_p8 = scmp.lt.s32.totalorder %s2670_s26, 4  ;;  %p3826_p9 = scmp.ge.s32.totalorder %s2670_s26, 1 }
  0x40   : > { %s3828_s17 = sshll.u32 %s2666_s25, 13  ;;  %s3829_s0 = sld [smem:[#allocation23_spill]] }
  0x41   : > { %p2852_p11 = pnand %p3826_p9, %p3825_p8  ;;  %s3830_s1 = sshll.u32 %s2791_s13, 9 }
  0x42   : > { %s254_s11 = scalar_lea.vmem [#allocation2], %s3830_s1  ;;  %s3808_s20 = sshll.u32 %s2791_s13, 8 }
  0x43   : > { %s3827_s28 = scalar_select %p2852_p11, 1, 0 }
  0x44   : > { %s264_s23 = sshll.u32 %s254_s11, 4  ;;  %s251_s30 = scalar_lea.sflag [#allocation3], %s2791_s13  ;;  %s2866_s23 = int_to_ptr.vmem [resolvable:$true] %s264_s23 }
  0x46   : > { %s2861_s29 = scalar_lea.hbm %s3829_s0, %s3828_s17  ;;  %s2463_s17 = scalar_lea.hbm %s3829_s0, 24576 }
  0x47   : > { %s2458_s15 = scalar_lea.hbm %s2861_s29, 8192  ;;  %p2464_p10 = scmp.lt.u32.totalorder %s2861_s29, %s3829_s0 }
  0x48   : > { %p2459_p0 = scmp.ne.s32.totalorder %s2861_s29, %s2458_s15  ;;  %p2465_p12 = scmp.lt.u32.totalorder %s2463_s17, %s2458_s15 }
  0x49   : > { %p2467_p4 = scmp.lt.u32.totalorder %s2458_s15, %s2861_s29 }
  0x4a   : > { %p2461_p1 = pnand %p2459_p0, %p2821_p3  ;;  %p2466_p2 = por %p2465_p12, %p2464_p10 }
  0x4c   : > { %p2462_p5 = pneg %p2461_p1  ;;  %p2468_p6 = por %p2467_p4, %p2466_p2 }
  0x4e   : > { %p2469_p7 = pnand %p2468_p6, %p2462_p5 }
  0x50   : > { %2472 = shalt.err (!%p2469_p7)
}
  0x51   : > { %s2473_s1 = scalar_lea.vmem %s2866_s23, 8192  ;;  %s2675_s11 = smov [#allocation2]  }
  0x52   : > { %p2474_p8 = scmp.ne.s32.totalorder %s2866_s23, %s2473_s1  ;;  %s2478_s8 = sshll.u32 %s2675_s11, 4  ;;  %s2479_s8 = int_to_ptr.vmem [resolvable:$false] %s2478_s8 }
  0x53   : > { %s2480_s12 = scalar_lea.vmem %s2479_s8, 16384  ;;  %p2481_p1 = scmp.lt.s32.totalorder %s2866_s23, %s2479_s8 }
  0x54   : > { %p2476_p9 = pnand %p2474_p8, %p2821_p3  ;;  %p2482_p11 = scmp.lt.s32.totalorder %s2480_s12, %s2473_s1 }
  0x56   : > { %p2477_p0 = pneg %p2476_p9  ;;  %p2483_p10 = por %p2482_p11, %p2481_p1 }
  0x58   : > { %p2484_p12 = pnand %p2483_p10, %p2477_p0 }
  0x5a   : > { %2487 = shalt.err (!%p2484_p12)
}
  0x5b   : > { %s3831_s15 = smov 16   ;;  %s3832_s14 = smov 256  }
  0x5c   : > { %2351 = dma.hbm_to_vmem [thread:$0]  (!%p2797_p13), %s2861_s29, 8192, %s2866_s23, %s251_s30, %s3832_s14, %s3832_s14, %s3831_s15  }
  0x5d   : > { %s2155_s17 = sshll.u32 %s2666_s25, 12  ;;  %s299_s19 = scalar_lea.vmem [#allocation7], %s3808_s20 }
  0x5e   : > { %s306_s1 = sshll.u32 %s299_s19, 4  ;;  %s3833_s2 = sld [smem:[#allocation25_spill]]  ;;  %s2905_s1 = int_to_ptr.vmem [resolvable:$true] %s306_s1 }
  0x64   : > { %s2903_s12 = scalar_lea.hbm %s3833_s2, %s2155_s17  ;;  %s2493_s30 = scalar_lea.hbm %s3833_s2, 12288 }
  0x65   : > { %s2488_s0 = scalar_lea.hbm %s2903_s12, 4096  ;;  %p2494_p4 = scmp.lt.u32.totalorder %s2903_s12, %s3833_s2 }
  0x66   : > { %p2489_p11 = scmp.ne.s32.totalorder %s2903_s12, %s2488_s0  ;;  %p2495_p6 = scmp.lt.u32.totalorder %s2493_s30, %s2488_s0 }
  0x67   : > { %p2497_p8 = scmp.lt.u32.totalorder %s2488_s0, %s2903_s12 }
  0x68   : > { %p2491_p5 = pnand %p2489_p11, %p2821_p3  ;;  %p2496_p7 = por %p2495_p6, %p2494_p4 }
  0x6a   : > { %p2492_p2 = pneg %p2491_p5  ;;  %p2498_p9 = por %p2497_p8, %p2496_p7 }
  0x6c   : > { %p2499_p0 = pnand %p2498_p9, %p2492_p2 }
  0x6e   : > { %2502 = shalt.err (!%p2499_p0)
}
  0x6f   : > { %s2503_s11 = scalar_lea.vmem %s2905_s1, 4096  ;;  %s2676_s8 = smov [#allocation7]  }
  0x70   : > { %p2504_p1 = scmp.ne.s32.totalorder %s2905_s1, %s2503_s11  ;;  %s2508_s23 = sshll.u32 %s2676_s8, 4  ;;  %s2509_s23 = int_to_ptr.vmem [resolvable:$false] %s2508_s23 }
  0x71   : > { %s2510_s20 = scalar_lea.vmem %s2509_s23, 8192  ;;  %p2511_p11 = scmp.lt.s32.totalorder %s2905_s1, %s2509_s23 }
  0x72   : > { %p2506_p10 = pnand %p2504_p1, %p2821_p3  ;;  %p2512_p5 = scmp.lt.s32.totalorder %s2510_s20, %s2503_s11 }
  0x74   : > { %p2507_p12 = pneg %p2506_p10  ;;  %p2513_p4 = por %p2512_p5, %p2511_p11 }
  0x76   : > { %p2514_p6 = pnand %p2513_p4, %p2507_p12 }
  0x78   : > { %2517 = shalt.err (!%p2514_p6)
}
  0x79   : > { %s2677_s0 = smov 128   ;;  %s2678_s29 = smov 8  }
  0x7a   : > { %2357 = dma.hbm_to_vmem [thread:$0]  (!%p2797_p13), %s2903_s12, 4096, %s2905_s1, %s2815_s7, %s2677_s0, %s2677_s0, %s2678_s29  }
  0x7b   : > { %s2934_s11 = scalar_lea.hbm %s3793_s3, %s2155_s17  ;;  %s3834_s8 = sshll.u32 %s2791_s13, 8 }
  0x7c   : > { %s320_s23 = scalar_lea.vmem [#allocation8], %s3834_s8  ;;  %s317_s2 = scalar_lea.sflag [#allocation9], %s2791_s13 }
  0x7d   : > { %s327_s20 = sshll.u32 %s320_s23, 4  ;;  %s2518_s21 = scalar_lea.hbm %s2934_s11, 4096  ;;  %s2938_s20 = int_to_ptr.vmem [resolvable:$true] %s327_s20 }
  0x7e   : > { %p2519_p2 = scmp.ne.s32.totalorder %s2934_s11, %s2518_s21  ;;  %s2523_s17 = scalar_lea.hbm %s3793_s3, 12288 }
  0x7f   : > { %p2524_p9 = scmp.lt.u32.totalorder %s2934_s11, %s3793_s3  ;;  %p2525_p0 = scmp.lt.u32.totalorder %s2523_s17, %s2518_s21 }
  0x80   : > { %p2521_p7 = pnand %p2519_p2, %p2821_p3  ;;  %p2527_p10 = scmp.lt.u32.totalorder %s2518_s21, %s2934_s11 }
  0x81   : > { %p2526_p1 = por %p2525_p0, %p2524_p9 }
  0x82   : > { %p2522_p8 = pneg %p2521_p7 }
  0x83   : > { %p2528_p12 = por %p2527_p10, %p2526_p1 }
  0x85   : > { %p2529_p11 = pnand %p2528_p12, %p2522_p8 }
  0x87   : > { %2532 = shalt.err (!%p2529_p11)
}
  0x88   : > { %s2533_s29 = scalar_lea.vmem %s2938_s20, 4096  ;;  %s2679_s30 = smov [#allocation8]  }
  0x89   : > { %p2534_p5 = scmp.ne.s32.totalorder %s2938_s20, %s2533_s29  ;;  %s2538_s19 = sshll.u32 %s2679_s30, 4  ;;  %s2539_s19 = int_to_ptr.vmem [resolvable:$false] %s2538_s19 }
  0x8a   : > { %s2540_s8 = scalar_lea.vmem %s2539_s19, 8192  ;;  %p2541_p2 = scmp.lt.s32.totalorder %s2938_s20, %s2539_s19 }
  0x8b   : > { %p2536_p4 = pnand %p2534_p5, %p2821_p3  ;;  %p2542_p7 = scmp.lt.s32.totalorder %s2540_s8, %s2533_s29 }
  0x8d   : > { %p2537_p6 = pneg %p2536_p4  ;;  %p2543_p9 = por %p2542_p7, %p2541_p2 }
  0x8f   : > { %p2544_p0 = pnand %p2543_p9, %p2537_p6 }
  0x91   : > { %2547 = shalt.err (!%p2544_p0)
}
  0x92   : > { %2360 = dma.hbm_to_vmem [thread:$0]  (!%p2797_p13), %s2934_s11, 4096, %s2938_s20, %s317_s2, %s3832_s14, %s3832_s14, %s3831_s15  }
  0x93   : > { %p3835_p3 = scmp.ne.s32.totalorder %s3827_s28, 0 }
  0x94   : > { %s2970_s21 = sand.u32 (!%p3835_p3), 1, %s2654_s22   ;;  %p3836_p8 = scmp.ne.s32.totalorder (!%p3835_p3), %s3817_s9, 0 }
  0x95   : > { %346 = sbr.rel (%p3835_p3) target bundleno = 1044 (0x414), region = 40  ;;  %s2973_s18 = sshll.u32 (!%p3835_p3), %s2970_s21, 9 }
  0x96   : > { %s349_s16 = scalar_lea.sflag (!%p3835_p3), [#allocation3], %s2970_s21  ;;  %s2977_s23 = scalar_lea.vmem (!%p3835_p3), [#allocation2], %s2973_s18 }
  0x9c   : > { %2629 = dma.done.wait (%p3836_p8), %s349_s16, 8192  }
  0x9d   : > { %2631 = vsyncadd (%p3836_p8), %s349_s16, 4294959104  ;;  %s357_s2 = sand.u32 1, %s2754_s27   ;;  %s2985_s28 = scalar_lea.vmem [#allocation5], %s2973_s18 }
  0x9e   : > { %s358_s13 = scalar_lea.sflag [#allocation6], %s357_s2 }
  0x9f   : > { %2633 = dma.done.wait (%p3836_p8), %s358_s13, 12288  }
  0xa0   : > { %2635 = vsyncadd (%p3836_p8), %s358_s13, 4294955008  ;;  %s2992_s15 = sshll.u32 %s2970_s21, 8  ;;  %s376_s11 = scalar_lea.sflag [#allocation9], %s2970_s21 }
  0xa1   : > { %s2995_s14 = scalar_lea.vmem [#allocation7], %s2992_s15  ;;  %s2999_s20 = scalar_lea.vmem [#allocation8], %s2992_s15 }
  0xa2   : > { %2637 = dma.done.wait (%p3836_p8), %s376_s11, 4096  }
  0xa3   : > { %2639 = vsyncadd (%p3836_p8), %s376_s11, 4294963200  ;;  %v507_v0 = vld [vmem:[%s2985_s28 + $0x8] sm:$0xff]  ;;  %v509_v1 = vld [vmem:[%s2985_s28 + $0x18] sm:$0xff]  ;;  %p433_p13 = scmp.lt.s32.totalorder %s2662_s24, 2  ;;  %s3535_s12 = scalar_lea.vmem [#allocation10], %s2973_s18 }
  0xa4   : > { %v506_v2 = vld [vmem:[%s2985_s28] sm:$0xff]  ;;  %v2159_v3 = vpack.c.bf16 %v509_v1, %v507_v0  ;;  %v508_v4 = vld [vmem:[%s2985_s28 + $0x10] sm:$0xff]  ;;  %v511_v5 = vld [vmem:[%s2985_s28 + $0x28] sm:$0xff]  ;;  %s3545_s0 = scalar_lea.vmem [#allocation11], %s2992_s15  ;;  %s2157_s29 = sshll.u32 %s2662_s24, 13 }
  0xa5   : > { %v513_v6 = vld [vmem:[%s2985_s28 + $0x38] sm:$0xff]  ;;  %v2161_v7 = vpack.c.bf16 %v508_v4, %v506_v2  ;;  %v510_v9 = vld [vmem:[%s2985_s28 + $0x20] sm:$0xff]  ;;  %v512_v10 = vld [vmem:[%s2985_s28 + $0x30] sm:$0xff]  ;;  %s434_s27 = scalar_select %p433_p13, %s2662_s24, 2 }
  0xa6   : > { %v2163_v8 = vpack.c.bf16 %v513_v6, %v511_v5  ;;  %v515_v11 = vld [vmem:[%s2985_s28 + $0x48] sm:$0xff]  ;;  %2160 = vmatprep.subr.bf16.mxu0 %v2159_v3  ;;  %v517_v12 = vld [vmem:[%s2985_s28 + $0x58] sm:$0xff]  ;;  %2303 = vmatprep.subr.bf16.mxu1 %v2159_v3  ;;  %v2165_v13 = vpack.c.bf16 %v512_v10, %v510_v9  ;;  %v514_v15 = vld [vmem:[%s2985_s28 + $0x40] sm:$0xff]  ;;  %s1903_s30 = sshll.u32 %s3535_s12, 4  ;;  %s3697_s18 = scalar_lea.hbm %s3795_s5, %s2157_s29  ;;  %s3699_s30 = int_to_ptr.vmem [resolvable:$true] %s1903_s30 }
  0xa7   : > { %2162 = vmatpush1.bf16.msra.mxu0 %v2161_v7  ;;  %2319 = vmatpush1.bf16.msra.mxu1 %v2161_v7  ;;  %v2167_v14 = vpack.c.bf16 %v517_v12, %v515_v11  ;;  %v516_v16 = vld [vmem:[%s2985_s28 + $0x50] sm:$0xff]  ;;  %v519_v17 = vld [vmem:[%s2985_s28 + $0x68] sm:$0xff]  ;;  %v521_v18 = vld [vmem:[%s2985_s28 + $0x78] sm:$0xff]  ;;  %s2335_s9 = smul.u32 5, %s434_s27  ;;  %s2158_s16 = sshll.u32 %s2662_s24, 12 }
  0xa8   : > { %2164 = vmatprep.subr.bf16.mxu0 %v2163_v8  ;;  %2304 = vmatprep.subr.bf16.mxu1 %v2163_v8  ;;  %v2169_v19 = vpack.c.bf16 %v516_v16, %v514_v15  ;;  %v2171_v20 = vpack.c.bf16 %v521_v18, %v519_v17  ;;  %v518_v21 = vld [vmem:[%s2985_s28 + $0x60] sm:$0xff]  ;;  %v520_v22 = vld [vmem:[%s2985_s28 + $0x70] sm:$0xff]  ;;  %v523_v23 = vld [vmem:[%s2985_s28 + $0x88] sm:$0xff]  ;;  %s1882_s2 = scalar_lea.sflag [#allocation4], %s2970_s21  ;;  %s2548_s13 = scalar_lea.vmem %s3699_s30, 8192 }
  0xa9   : > { %v525_v24 = vld [vmem:[%s2985_s28 + $0x98] sm:$0xff]  ;;  %v2173_v25 = vpack.c.bf16 %v520_v22, %v518_v21  ;;  %v522_v27 = vld [vmem:[%s2985_s28 + $0x80] sm:$0xff]  ;;  %v524_v28 = vld [vmem:[%s2985_s28 + $0x90] sm:$0xff]  ;;  %s3188_s17 = scalar_lea.vmem %s3794_s4, %s2335_s9  ;;  %p2549_p1 = scmp.ne.s32.totalorder %s3699_s30, %s2548_s13 }
  0xaa   : > { %v2175_v26 = vpack.c.bf16 %v525_v24, %v523_v23  ;;  %v527_v29 = vld [vmem:[%s2985_s28 + $0xa8] sm:$0xff]  ;;  %v529_v30 = vld [vmem:[%s2985_s28 + $0xb8] sm:$0xff]  ;;  %v2177_v31 = vpack.c.bf16 %v524_v28, %v522_v27  ;;  %v526_v33 = vld [vmem:[%s2985_s28 + $0xa0] sm:$0xff]  ;;  %p3837_p10 = scmp.ne.s32.totalorder %s3818_s10, 0 }
  0xab   : > { %2166 = vmatpush1.bf16.msra.mxu0 %v2165_v13  ;;  %2320 = vmatpush1.bf16.msra.mxu1 %v2165_v13  ;;  %v2179_v32 = vpack.c.bf16 %v529_v30, %v527_v29  ;;  %v528_v34 = vld [vmem:[%s2985_s28 + $0xb0] sm:$0xff]  ;;  %v531_v35 = vld [vmem:[%s2985_s28 + $0xc8] sm:$0xff]  ;;  %v533_v36 = vld [vmem:[%s2985_s28 + $0xd8] sm:$0xff] }
  0xac   : > { %2168 = vmatprep.subr.bf16.mxu0 %v2167_v14  ;;  %2305 = vmatprep.subr.bf16.mxu1 %v2167_v14  ;;  %v2181_v37 = vpack.c.bf16 %v528_v34, %v526_v33  ;;  %v2183_v38 = vpack.c.bf16 %v533_v36, %v531_v35  ;;  %v530_v39 = vld [vmem:[%s2985_s28 + $0xc0] sm:$0xff]  ;;  %v532_v40 = vld [vmem:[%s2985_s28 + $0xd0] sm:$0xff]  ;;  %v440_v41 = vld [vmem:[%s2977_s23 + $0x8] sm:$0xff]  ;;  %p2550_p12 = pnand %p2549_p1, %p3837_p10 }
  0xad   : > { %v535_v42 = vld [vmem:[%s2985_s28 + $0xe8] sm:$0xff]  ;;  %v537_v43 = vld [vmem:[%s2985_s28 + $0xf8] sm:$0xff]  ;;  %645 = vmatprep.mubr.f32.mxu0 %v440_v41  ;;  %v2185_v44 = vpack.c.bf16 %v532_v40, %v530_v39  ;;  %v534_v46 = vld [vmem:[%s2985_s28 + $0xe0] sm:$0xff]  ;;  %v2680_v40 = vmov 0.0|0.0  }
  0xae   : > { %v2187_v45 = vpack.c.bf16 %v537_v43, %v535_v42  ;;  %v536_v47 = vld [vmem:[%s2985_s28 + $0xf0] sm:$0xff]  ;;  %v539_v48 = vld [vmem:[%s2985_s28 + $0x108] sm:$0xff]  ;;  %v541_v49 = vld [vmem:[%s2985_s28 + $0x118] sm:$0xff]  ;;  %p2551_p11 = pneg %p2550_p12 }
  0xaf   : > { %2170 = vmatpush1.bf16.msra.mxu0 %v2169_v19  ;;  %2321 = vmatpush1.bf16.msra.mxu1 %v2169_v19  ;;  %v2189_v50 = vpack.c.bf16 %v536_v47, %v534_v46  ;;  %v2191_v51 = vpack.c.bf16 %v541_v49, %v539_v48  ;;  %v538_v52 = vld [vmem:[%s2985_s28 + $0x100] sm:$0xff]  ;;  %v540_v53 = vld [vmem:[%s2985_s28 + $0x110] sm:$0xff]  ;;  %v543_v54 = vld [vmem:[%s2985_s28 + $0x128] sm:$0xff] }
  0xb0   : > { %2172 = vmatprep.subr.bf16.mxu0 %v2171_v20  ;;  %2306 = vmatprep.subr.bf16.mxu1 %v2171_v20  ;;  %v545_v55 = vld [vmem:[%s2985_s28 + $0x138] sm:$0xff]  ;;  %v2193_v56 = vpack.c.bf16 %v540_v53, %v538_v52  ;;  %v472_v57 = vld [vmem:[%s2977_s23 + $0x108] sm:$0xff]  ;;  %v542_v59 = vld [vmem:[%s2985_s28 + $0x120] sm:$0xff] }
  0xb1   : > { %v2195_v58 = vpack.c.bf16 %v545_v55, %v543_v54  ;;  %v544_v60 = vld [vmem:[%s2985_s28 + $0x130] sm:$0xff]  ;;  %v547_v61 = vld [vmem:[%s2985_s28 + $0x148] sm:$0xff]  ;;  %v549_v62 = vld [vmem:[%s2985_s28 + $0x158] sm:$0xff]  ;;  %741 = vmatprep.mubr.f32.mxu1 %v472_v57 }
  0xb2   : > { %v2197_v63 = vpack.c.bf16 %v544_v60, %v542_v59  ;;  %v2199_v0 = vpack.c.bf16 %v549_v62, %v547_v61  ;;  %v546_v1 = vld [vmem:[%s2985_s28 + $0x140] sm:$0xff]  ;;  %v548_v2 = vld [vmem:[%s2985_s28 + $0x150] sm:$0xff]  ;;  %v551_v3 = vld [vmem:[%s2985_s28 + $0x168] sm:$0xff] }
  0xb3   : > { %2174 = vmatpush1.bf16.msra.mxu0 %v2173_v25  ;;  %2322 = vmatpush1.bf16.msra.mxu1 %v2173_v25  ;;  %v553_v4 = vld [vmem:[%s2985_s28 + $0x178] sm:$0xff]  ;;  %v2201_v5 = vpack.c.bf16 %v548_v2, %v546_v1  ;;  %v550_v7 = vld [vmem:[%s2985_s28 + $0x160] sm:$0xff]  ;;  %v552_v8 = vld [vmem:[%s2985_s28 + $0x170] sm:$0xff] }
  0xb4   : > { %2176 = vmatprep.subr.bf16.mxu0 %v2175_v26  ;;  %2307 = vmatprep.subr.bf16.mxu1 %v2175_v26  ;;  %v2203_v6 = vpack.c.bf16 %v553_v4, %v551_v3  ;;  %v555_v9 = vld [vmem:[%s2985_s28 + $0x188] sm:$0xff]  ;;  %v557_v10 = vld [vmem:[%s2985_s28 + $0x198] sm:$0xff]  ;;  %v2205_v11 = vpack.c.bf16 %v552_v8, %v550_v7  ;;  %v554_v13 = vld [vmem:[%s2985_s28 + $0x180] sm:$0xff] }
  0xb5   : > { %v2207_v12 = vpack.c.bf16 %v557_v10, %v555_v9  ;;  %v556_v14 = vld [vmem:[%s2985_s28 + $0x190] sm:$0xff]  ;;  %v559_v15 = vld [vmem:[%s2985_s28 + $0x1a8] sm:$0xff]  ;;  %v561_v16 = vld [vmem:[%s2985_s28 + $0x1b8] sm:$0xff] }
  0xb6   : > { %v2209_v17 = vpack.c.bf16 %v556_v14, %v554_v13  ;;  %v2211_v18 = vpack.c.bf16 %v561_v16, %v559_v15  ;;  %v558_v19 = vld [vmem:[%s2985_s28 + $0x1a0] sm:$0xff]  ;;  %v560_v20 = vld [vmem:[%s2985_s28 + $0x1b0] sm:$0xff]  ;;  %v563_v21 = vld [vmem:[%s2985_s28 + $0x1c8] sm:$0xff] }
  0xb7   : > { %2178 = vmatpush1.bf16.msra.mxu0 %v2177_v31  ;;  %2323 = vmatpush1.bf16.msra.mxu1 %v2177_v31  ;;  %v565_v22 = vld [vmem:[%s2985_s28 + $0x1d8] sm:$0xff]  ;;  %v2213_v23 = vpack.c.bf16 %v560_v20, %v558_v19  ;;  %v562_v25 = vld [vmem:[%s2985_s28 + $0x1c0] sm:$0xff]  ;;  %v564_v26 = vld [vmem:[%s2985_s28 + $0x1d0] sm:$0xff] }
  0xb8   : > { %2180 = vmatprep.subr.bf16.mxu0 %v2179_v32  ;;  %2308 = vmatprep.subr.bf16.mxu1 %v2179_v32  ;;  %v2215_v24 = vpack.c.bf16 %v565_v22, %v563_v21  ;;  %v567_v27 = vld [vmem:[%s2985_s28 + $0x1e8] sm:$0xff]  ;;  %v569_v28 = vld [vmem:[%s2985_s28 + $0x1f8] sm:$0xff]  ;;  %v2217_v29 = vpack.c.bf16 %v564_v26, %v562_v25  ;;  %v566_v31 = vld [vmem:[%s2985_s28 + $0x1e0] sm:$0xff] }
  0xb9   : > { %v2219_v30 = vpack.c.bf16 %v569_v28, %v567_v27  ;;  %v568_v32 = vld [vmem:[%s2985_s28 + $0x1f0] sm:$0xff]  ;;  %v1030_v34 = vld [vmem:[%s2995_s14] sm:$0xff]  ;;  %v1031_v35 = vld [vmem:[%s2995_s14 + $0x8] sm:$0xff]  ;;  %s2682_s28 = smov [#allocation10]  }
  0xba   : > { %v2221_v33 = vpack.c.bf16 %v568_v32, %v566_v31  ;;  %v439_v36 = vld [vmem:[%s2977_s23] sm:$0xff]  ;;  %v474_v39 = vld [vmem:[%s2977_s23 + $0x118] sm:$0xff]  ;;  %v2224_v41 = vpack.c.bf16 %v1031_v35, %v1030_v34  ;;  %v1032_v42 = vld [vmem:[%s2995_s14 + $0x10] sm:$0xff]  ;;  %s2552_s15 = sshll.u32 %s2682_s28, 4  ;;  %s2553_s15 = int_to_ptr.vmem [resolvable:$false] %s2552_s15 }
  0xbb   : > { %2182 = vmatpush1.bf16.msra.mxu0 %v2181_v37  ;;  %2324 = vmatpush1.bf16.msra.mxu1 %v2181_v37  ;;  %v471_v37 = vld [vmem:[%s2977_s23 + $0x100] sm:$0xff]  ;;  %v1033_v43 = vld [vmem:[%s2995_s14 + $0x18] sm:$0xff]  ;;  %v444_v46 = vld [vmem:[%s2977_s23 + $0x28] sm:$0xff]  ;;  %p2555_p5 = scmp.lt.s32.totalorder %s3699_s30, %s2553_s15 }
  0xbc   : > { %2184 = vmatprep.subr.bf16.mxu0 %v2183_v38  ;;  %2309 = vmatprep.subr.bf16.mxu1 %v2183_v38  ;;  %v442_v38 = vld [vmem:[%s2977_s23 + $0x18] sm:$0xff]  ;;  %v476_v47 = vld [vmem:[%s2977_s23 + $0x128] sm:$0xff]  ;;  %v2227_v48 = vpack.c.bf16 %v1033_v43, %v1032_v42  ;;  %v1034_v49 = vld [vmem:[%s2995_s14 + $0x20] sm:$0xff] }
  0xbd   : > { %v475_v52 = vld [vmem:[%s2977_s23 + $0x120] sm:$0xff]  ;;  %v446_v53 = vld [vmem:[%s2977_s23 + $0x38] sm:$0xff]  ;;  %v477_v59 = vld [vmem:[%s2977_s23 + $0x130] sm:$0xff] }
  0xbe   : > { %v478_v54 = vld [vmem:[%s2977_s23 + $0x138] sm:$0xff]  ;;  %v448_v60 = vld [vmem:[%s2977_s23 + $0x48] sm:$0xff]  ;;  %v447_v1 = vld [vmem:[%s2977_s23 + $0x40] sm:$0xff] }
  0xbf   : > { %2186 = vmatpush1.bf16.msra.mxu0 %v2185_v44  ;;  %2325 = vmatpush1.bf16.msra.mxu1 %v2185_v44  ;;  %v441_v44 = vld [vmem:[%s2977_s23 + $0x10] sm:$0xff]  ;;  %v1037_v57 = vld [vmem:[%s2995_s14 + $0x38] sm:$0xff]  ;;  %v480_v61 = vld [vmem:[%s2977_s23 + $0x148] sm:$0xff] }
  0xc0   : > { %2188 = vmatprep.subr.bf16.mxu0 %v2187_v45  ;;  %2310 = vmatprep.subr.bf16.mxu1 %v2187_v45  ;;  %v473_v45 = vld [vmem:[%s2977_s23 + $0x110] sm:$0xff]  ;;  %v479_v2 = vld [vmem:[%s2977_s23 + $0x140] sm:$0xff]  ;;  %v450_v3 = vld [vmem:[%s2977_s23 + $0x58] sm:$0xff] }
  0xc1   : > { %v482_v4 = vld [vmem:[%s2977_s23 + $0x158] sm:$0xff]  ;;  %v449_v8 = vld [vmem:[%s2977_s23 + $0x50] sm:$0xff]  ;;  %v452_v10 = vld [vmem:[%s2977_s23 + $0x68] sm:$0xff] }
  0xc2   : > { %v1041_v7 = vld [vmem:[%s2995_s14 + $0x58] sm:$0xff]  ;;  %v481_v9 = vld [vmem:[%s2977_s23 + $0x150] sm:$0xff]  ;;  %v1042_v13 = vld [vmem:[%s2995_s14 + $0x60] sm:$0xff] }
  0xc3   : > { %2190 = vmatpush1.bf16.msra.mxu0 %v2189_v50  ;;  %2326 = vmatpush1.bf16.msra.mxu1 %v2189_v50  ;;  %v1035_v50 = vld [vmem:[%s2995_s14 + $0x28] sm:$0xff]  ;;  %v451_v15 = vld [vmem:[%s2977_s23 + $0x60] sm:$0xff]  ;;  %v1044_v20 = vld [vmem:[%s2995_s14 + $0x70] sm:$0xff] }
  0xc4   : > { %2192 = vmatprep.subr.bf16.mxu0 %v2191_v51  ;;  %2311 = vmatprep.subr.bf16.mxu1 %v2191_v51  ;;  %v443_v51 = vld [vmem:[%s2977_s23 + $0x20] sm:$0xff]  ;;  %v2230_v55 = vpack.c.bf16 %v1035_v50, %v1034_v49  ;;  %v1043_v14 = vld [vmem:[%s2995_s14 + $0x68] sm:$0xff]  ;;  %v1045_v21 = vld [vmem:[%s2995_s14 + $0x78] sm:$0xff] }
  0xc5   : > { %v483_v16 = vld [vmem:[%s2977_s23 + $0x160] sm:$0xff]  ;;  %v2242_v19 = vpack.c.bf16 %v1043_v14, %v1042_v13  ;;  %v453_v22 = vld [vmem:[%s2977_s23 + $0x70] sm:$0xff]  ;;  %v488_v25 = vld [vmem:[%s2977_s23 + $0x188] sm:$0xff]  ;;  %v2245_v26 = vpack.c.bf16 %v1045_v21, %v1044_v20 }
  0xc6   : > { %v1046_v27 = vld [vmem:[%s2995_s14 + $0x80] sm:$0xff]  ;;  %v1047_v28 = vld [vmem:[%s2995_s14 + $0x88] sm:$0xff]  ;;  %v458_v31 = vld [vmem:[%s2977_s23 + $0x98] sm:$0xff] }
  0xc7   : > { %2194 = vmatpush1.bf16.msra.mxu0 %v2193_v56  ;;  %2327 = vmatpush1.bf16.msra.mxu1 %v2193_v56  ;;  %v1036_v56 = vld [vmem:[%s2995_s14 + $0x30] sm:$0xff]  ;;  %v490_v32 = vld [vmem:[%s2977_s23 + $0x198] sm:$0xff]  ;;  %v1050_v42 = vld [vmem:[%s2995_s14 + $0xa0] sm:$0xff] }
  0xc8   : > { %2196 = vmatprep.subr.bf16.mxu0 %v2195_v58  ;;  %2312 = vmatprep.subr.bf16.mxu1 %v2195_v58  ;;  %v445_v58 = vld [vmem:[%s2977_s23 + $0x30] sm:$0xff]  ;;  %v2233_v62 = vpack.c.bf16 %v1037_v57, %v1036_v56  ;;  %v1049_v35 = vld [vmem:[%s2995_s14 + $0x98] sm:$0xff]  ;;  %v1051_v43 = vld [vmem:[%s2995_s14 + $0xa8] sm:$0xff] }
  0xc9   : > { %v1048_v34 = vld [vmem:[%s2995_s14 + $0x90] sm:$0xff]  ;;  %v1053_v50 = vld [vmem:[%s2995_s14 + $0xb8] sm:$0xff]  ;;  %v1054_v56 = vld [vmem:[%s2995_s14 + $0xc0] sm:$0xff] }
  0xca   : > { %v1052_v49 = vld [vmem:[%s2995_s14 + $0xb0] sm:$0xff]  ;;  %v1055_v57 = vld [vmem:[%s2995_s14 + $0xc8] sm:$0xff]  ;;  %v503_v21 = vld [vmem:[%s3188_s17] sm:$0x3] }
  0xcb   : > { %2198 = vmatpush1.bf16.msra.mxu0 %v2197_v63  ;;  %2328 = vmatpush1.bf16.msra.mxu1 %v2197_v63  ;;  %v1038_v63 = vld [vmem:[%s2995_s14 + $0x40] sm:$0xff]  ;;  %v1059_v13 = vld [vmem:[%s2995_s14 + $0xe8] sm:$0xff] }
  0xcc   : > { %2200 = vmatprep.subr.bf16.mxu0 %v2199_v0  ;;  %2313 = vmatprep.subr.bf16.mxu1 %v2199_v0  ;;  %v1039_v0 = vld [vmem:[%s2995_s14 + $0x48] sm:$0xff] }
  0xcf   : > { %2202 = vmatpush1.bf16.msra.mxu0 %v2201_v5  ;;  %2329 = vmatpush1.bf16.msra.mxu1 %v2201_v5  ;;  %v2236_v5 = vpack.c.bf16 %v1039_v0, %v1038_v63  ;;  %v1056_v63 = vld [vmem:[%s2995_s14 + $0xd0] sm:$0xff]  ;;  %v1057_v0 = vld [vmem:[%s2995_s14 + $0xd8] sm:$0xff] }
  0xd0   : > { %2204 = vmatprep.subr.bf16.mxu0 %v2203_v6  ;;  %2314 = vmatprep.subr.bf16.mxu1 %v2203_v6  ;;  %v1040_v6 = vld [vmem:[%s2995_s14 + $0x50] sm:$0xff] }
  0xd3   : > { %2206 = vmatpush1.bf16.msra.mxu0 %v2205_v11  ;;  %2330 = vmatpush1.bf16.msra.mxu1 %v2205_v11  ;;  %v484_v11 = vld [vmem:[%s2977_s23 + $0x168] sm:$0xff] }
  0xd4   : > { %2208 = vmatprep.subr.bf16.mxu0 %v2207_v12  ;;  %2315 = vmatprep.subr.bf16.mxu1 %v2207_v12  ;;  %v2239_v12 = vpack.c.bf16 %v1041_v7, %v1040_v6  ;;  %v467_v6 = vld [vmem:[%s2977_s23 + $0xe0] sm:$0xff] }
  0xd5   : > { %v499_v7 = vld [vmem:[%s2977_s23 + $0x1e0] sm:$0xff] }
  0xd7   : > { %2210 = vmatpush1.bf16.msra.mxu0 %v2209_v17  ;;  %2331 = vmatpush1.bf16.msra.mxu1 %v2209_v17  ;;  %v454_v17 = vld [vmem:[%s2977_s23 + $0x78] sm:$0xff] }
  0xd8   : > { %2212 = vmatprep.subr.bf16.mxu0 %v2211_v18  ;;  %2316 = vmatprep.subr.bf16.mxu1 %v2211_v18  ;;  %v486_v18 = vld [vmem:[%s2977_s23 + $0x178] sm:$0xff] }
  0xdb   : > { %2214 = vmatpush1.bf16.msra.mxu0 %v2213_v23  ;;  %2332 = vmatpush1.bf16.msra.mxu1 %v2213_v23  ;;  %v485_v23 = vld [vmem:[%s2977_s23 + $0x170] sm:$0xff] }
  0xdc   : > { %2216 = vmatprep.subr.bf16.mxu0 %v2215_v24  ;;  %2317 = vmatprep.subr.bf16.mxu1 %v2215_v24  ;;  %v456_v24 = vld [vmem:[%s2977_s23 + $0x88] sm:$0xff] }
  0xdf   : > { %2218 = vmatpush1.bf16.msra.mxu0 %v2217_v29  ;;  %2333 = vmatpush1.bf16.msra.mxu1 %v2217_v29  ;;  %v455_v29 = vld [vmem:[%s2977_s23 + $0x80] sm:$0xff] }
  0xe0   : > { %2220 = vmatprep.subr.bf16.mxu0 %v2219_v30  ;;  %2318 = vmatprep.subr.bf16.mxu1 %v2219_v30  ;;  %v487_v30 = vld [vmem:[%s2977_s23 + $0x180] sm:$0xff] }
  0xe3   : > { %2222 = vmatpush1.bf16.msra.mxu0 %v2221_v33  ;;  %2334 = vmatpush1.bf16.msra.mxu1 %v2221_v33  ;;  %v2248_v33 = vpack.c.bf16 %v1047_v28, %v1046_v27 }
  0xe4   : > { %2223 = vmatprep.subr.bf16.mxu1 %v2680_v40 }
  0xe6   : > { %646 = vmatmul.mubr.f32.vlgmr.msra.gmra.mrb[0].mxu0 %v439_v36  ;;  %742 = vmatmul.mubr.f32.vlgmr.msra.gmra.mrb[0].mxu1 %v471_v37  ;;  %v457_v36 = vld [vmem:[%s2977_s23 + $0x90] sm:$0xff] }
  0xe7   : > { %651 = vmatprep.mubr.f32.mxu0 %v442_v38  ;;  %747 = vmatprep.mubr.f32.mxu1 %v474_v39  ;;  %v489_v37 = vld [vmem:[%s2977_s23 + $0x190] sm:$0xff]  ;;  %v460_v38 = vld [vmem:[%s2977_s23 + $0xa8] sm:$0xff] }
  0xe8   : > { %2225 = vmatpush1.bf16.msra.mxu1 %v2224_v41  ;;  %v492_v39 = vld [vmem:[%s2977_s23 + $0x1a8] sm:$0xff]  ;;  %v2251_v41 = vpack.c.bf16 %v1049_v35, %v1048_v34 }
  0xe9   : > { %2226 = vmatprep.subr.bf16.mxu1 %v2680_v40 }
  0xea   : > { %652 = vmatmul.mubr.f32.gmra.mrb[2].mxu0 %v441_v44  ;;  %748 = vmatmul.mubr.f32.gmra.mrb[2].mxu1 %v473_v45  ;;  %v459_v44 = vld [vmem:[%s2977_s23 + $0xa0] sm:$0xff] }
  0xeb   : > { %657 = vmatprep.mubr.f32.mxu0 %v444_v46  ;;  %753 = vmatprep.mubr.f32.mxu1 %v476_v47  ;;  %v491_v45 = vld [vmem:[%s2977_s23 + $0x1a0] sm:$0xff]  ;;  %v462_v46 = vld [vmem:[%s2977_s23 + $0xb8] sm:$0xff] }
  0xec   : > { %2228 = vmatpush1.bf16.msra.mxu1 %v2227_v48  ;;  %v494_v47 = vld [vmem:[%s2977_s23 + $0x1b8] sm:$0xff]  ;;  %v2254_v48 = vpack.c.bf16 %v1051_v43, %v1050_v42 }
  0xed   : > { %2229 = vmatprep.subr.bf16.mxu1 %v2680_v40 }
  0xee   : > { %658 = vmatmul.mubr.f32.gmra.mrb[4].mxu0 %v443_v51  ;;  %754 = vmatmul.mubr.f32.gmra.mrb[4].mxu1 %v475_v52  ;;  %v461_v51 = vld [vmem:[%s2977_s23 + $0xb0] sm:$0xff] }
  0xef   : > { %663 = vmatprep.mubr.f32.mxu0 %v446_v53  ;;  %759 = vmatprep.mubr.f32.mxu1 %v478_v54  ;;  %v493_v52 = vld [vmem:[%s2977_s23 + $0x1b0] sm:$0xff]  ;;  %v464_v53 = vld [vmem:[%s2977_s23 + $0xc8] sm:$0xff] }
  0xf0   : > { %2231 = vmatpush1.bf16.msra.mxu1 %v2230_v55  ;;  %v496_v54 = vld [vmem:[%s2977_s23 + $0x1c8] sm:$0xff]  ;;  %v2257_v55 = vpack.c.bf16 %v1053_v50, %v1052_v49 }
  0xf1   : > { %2232 = vmatprep.subr.bf16.mxu1 %v2680_v40 }
  0xf2   : > { %664 = vmatmul.mubr.f32.gmra.mrb[6].mxu0 %v445_v58  ;;  %760 = vmatmul.mubr.f32.gmra.mrb[6].mxu1 %v477_v59  ;;  %v463_v58 = vld [vmem:[%s2977_s23 + $0xc0] sm:$0xff] }
  0xf3   : > { %669 = vmatprep.mubr.f32.mxu0 %v448_v60  ;;  %765 = vmatprep.mubr.f32.mxu1 %v480_v61  ;;  %v495_v59 = vld [vmem:[%s2977_s23 + $0x1c0] sm:$0xff]  ;;  %v466_v60 = vld [vmem:[%s2977_s23 + $0xd8] sm:$0xff] }
  0xf4   : > { %2234 = vmatpush1.bf16.msra.mxu1 %v2233_v62  ;;  %v498_v61 = vld [vmem:[%s2977_s23 + $0x1d8] sm:$0xff]  ;;  %v2260_v62 = vpack.c.bf16 %v1055_v57, %v1054_v56 }
  0xf5   : > { %2235 = vmatprep.subr.bf16.mxu1 %v2680_v40 }
  0xf6   : > { %670 = vmatmul.mubr.f32.gmra.mrb[8].mxu0 %v447_v1  ;;  %766 = vmatmul.mubr.f32.gmra.mrb[8].mxu1 %v479_v2  ;;  %v465_v1 = vld [vmem:[%s2977_s23 + $0xd0] sm:$0xff] }
  0xf7   : > { %675 = vmatprep.mubr.f32.mxu0 %v450_v3  ;;  %771 = vmatprep.mubr.f32.mxu1 %v482_v4  ;;  %v497_v2 = vld [vmem:[%s2977_s23 + $0x1d0] sm:$0xff]  ;;  %v468_v3 = vld [vmem:[%s2977_s23 + $0xe8] sm:$0xff] }
  0xf8   : > { %2237 = vmatpush1.bf16.msra.mxu1 %v2236_v5  ;;  %v500_v4 = vld [vmem:[%s2977_s23 + $0x1e8] sm:$0xff]  ;;  %v2263_v5 = vpack.c.bf16 %v1057_v0, %v1056_v63 }
  0xf9   : > { %2238 = vmatprep.subr.bf16.mxu1 %v2680_v40 }
  0xfa   : > { %676 = vmatmul.mubr.f32.gmra.mrb[10].mxu0 %v449_v8  ;;  %772 = vmatmul.mubr.f32.gmra.mrb[10].mxu1 %v481_v9  ;;  %v470_v8 = vld [vmem:[%s2977_s23 + $0xf8] sm:$0xff] }
  0xfb   : > { %681 = vmatprep.mubr.f32.mxu0 %v452_v10  ;;  %777 = vmatprep.mubr.f32.mxu1 %v484_v11  ;;  %v502_v9 = vld [vmem:[%s2977_s23 + $0x1f8] sm:$0xff]  ;;  %v469_v10 = vld [vmem:[%s2977_s23 + $0xf0] sm:$0xff] }
  0xfc   : > { %2240 = vmatpush1.bf16.msra.mxu1 %v2239_v12  ;;  %v501_v11 = vld [vmem:[%s2977_s23 + $0x1f0] sm:$0xff]  ;;  %v1058_v12 = vld [vmem:[%s2995_s14 + $0xe0] sm:$0xff]  ;;  %s1921_s23 = sshll.u32 %s3545_s0, 4  ;;  %s3741_s23 = int_to_ptr.vmem [resolvable:$true] %s1921_s23 }
  0xfd   : > { %2241 = vmatprep.subr.bf16.mxu1 %v2680_v40  ;;  %v2266_v14 = vpack.c.bf16 %v1059_v13, %v1058_v12 }
  0xfe   : > { %682 = vmatmul.mubr.f32.gmra.mrb[12].mxu0 %v451_v15  ;;  %778 = vmatmul.mubr.f32.gmra.mrb[12].mxu1 %v483_v16  ;;  %v1060_v15 = vld [vmem:[%s2995_s14 + $0xf0] sm:$0xff]  ;;  %v1061_v16 = vld [vmem:[%s2995_s14 + $0xf8] sm:$0xff]  ;;  %s2554_s14 = scalar_lea.vmem %s2553_s15, 16384 }
  0xff   : > { %687 = vmatprep.mubr.f32.mxu0 %v454_v17  ;;  %783 = vmatprep.mubr.f32.mxu1 %v486_v18  ;;  %v2269_v17 = vpack.c.bf16 %v1061_v16, %v1060_v15  ;;  %v571_v18 = vlaneseq  ;;  %p2556_p4 = scmp.lt.s32.totalorder %s2554_s14, %s2548_s13 }
 0x100   : > { %2243 = vmatpush1.bf16.msra.mxu1 %v2242_v19 }
 0x101   : > { %2244 = vmatprep.subr.bf16.mxu1 %v2680_v40  ;;  %v3183_v19 = vshrl.u32 %v571_v18, 7  ;;  %p2557_p6 = por %p2556_p4, %p2555_p5 }
 0x102   : > { %688 = vmatmul.mubr.f32.gmra.mrb[14].mxu0 %v453_v22  ;;  %784 = vmatmul.mubr.f32.gmra.mrb[14].mxu1 %v485_v23 }
 0x103   : > { %693 = vmatprep.mubr.f32.mxu0 %v456_v24  ;;  %789 = vmatprep.mubr.f32.mxu1 %v488_v25  ;;  %v573_v20 = vsub.s32 0, %v3183_v19  ;;  %p2558_p2 = pnand %p2557_p6, %p2551_p11 }
 0x104   : > { %2246 = vmatpush1.bf16.msra.mxu1 %v2245_v26 }
 0x105   : > { %2247 = vmatprep.subr.bf16.mxu1 %v2680_v40  ;;  %v3195_v22 = vrot.slane %v503_v21, %v573_v20 }
 0x106   : > { %694 = vmatmul.mubr.f32.gmra.mrb[16].mxu0 %v455_v29  ;;  %790 = vmatmul.mubr.f32.gmra.mrb[16].mxu1 %v487_v30 }
 0x107   : > { %699 = vmatprep.mubr.f32.mxu0 %v458_v31  ;;  %795 = vmatprep.mubr.f32.mxu1 %v490_v32 }
 0x108   : > { %2249 = vmatpush1.bf16.msra.mxu1 %v2248_v33 }
 0x109   : > { %2250 = vmatprep.subr.bf16.mxu1 %v2680_v40 }
 0x10a   : > { %700 = vmatmul.mubr.f32.gmra.mrb[18].mxu0 %v457_v36  ;;  %796 = vmatmul.mubr.f32.gmra.mrb[18].mxu1 %v489_v37 }
 0x10b   : > { %705 = vmatprep.mubr.f32.mxu0 %v460_v38  ;;  %801 = vmatprep.mubr.f32.mxu1 %v492_v39 }
 0x10c   : > { %2252 = vmatpush1.bf16.msra.mxu1 %v2251_v41 }
 0x10d   : > { %2253 = vmatprep.subr.bf16.mxu1 %v2680_v40 }
 0x10e   : > { %706 = vmatmul.mubr.f32.gmra.mrb[20].mxu0 %v459_v44  ;;  %802 = vmatmul.mubr.f32.gmra.mrb[20].mxu1 %v491_v45 }
 0x10f   : > { %711 = vmatprep.mubr.f32.mxu0 %v462_v46  ;;  %807 = vmatprep.mubr.f32.mxu1 %v494_v47 }
 0x110   : > { %2255 = vmatpush1.bf16.msra.mxu1 %v2254_v48 }
 0x111   : > { %2256 = vmatprep.subr.bf16.mxu1 %v2680_v40 }
 0x112   : > { %712 = vmatmul.mubr.f32.gmra.mrb[22].mxu0 %v461_v51  ;;  %808 = vmatmul.mubr.f32.gmra.mrb[22].mxu1 %v493_v52 }
 0x113   : > { %717 = vmatprep.mubr.f32.mxu0 %v464_v53  ;;  %813 = vmatprep.mubr.f32.mxu1 %v496_v54 }
 0x114   : > { %2258 = vmatpush1.bf16.msra.mxu1 %v2257_v55 }
 0x115   : > { %2259 = vmatprep.subr.bf16.mxu1 %v2680_v40 }
 0x116   : > { %718 = vmatmul.mubr.f32.gmra.mrb[24].mxu0 %v463_v58  ;;  %814 = vmatmul.mubr.f32.gmra.mrb[24].mxu1 %v495_v59 }
 0x117   : > { %723 = vmatprep.mubr.f32.mxu0 %v466_v60  ;;  %819 = vmatprep.mubr.f32.mxu1 %v498_v61 }
 0x118   : > { %2261 = vmatpush1.bf16.msra.mxu1 %v2260_v62 }
 0x119   : > { %2262 = vmatprep.subr.bf16.mxu1 %v2680_v40 }
 0x11a   : > { %724 = vmatmul.mubr.f32.gmra.mrb[26].mxu0 %v465_v1  ;;  %820 = vmatmul.mubr.f32.gmra.mrb[26].mxu1 %v497_v2 }
 0x11b   : > { %729 = vmatprep.mubr.f32.mxu0 %v468_v3  ;;  %825 = vmatprep.mubr.f32.mxu1 %v500_v4 }
 0x11c   : > { %2264 = vmatpush1.bf16.msra.mxu1 %v2263_v5 }
 0x11d   : > { %2265 = vmatprep.subr.bf16.mxu1 %v2680_v40 }
 0x11e   : > { %730 = vmatmul.mubr.f32.gmra.mrb[28].mxu0 %v467_v6  ;;  %826 = vmatmul.mubr.f32.gmra.mrb[28].mxu1 %v499_v7 }
 0x11f   : > { %735 = vmatprep.mubr.f32.mxu0 %v470_v8  ;;  %831 = vmatprep.mubr.f32.mxu1 %v502_v9 }
 0x120   : > { %2267 = vmatpush1.bf16.msra.mxu1 %v2266_v14 }
 0x121   : > { %2268 = vmatprep.subr.bf16.mxu1 %v2680_v40  ;;  %v577_v40 = vsub.s32 1, %v3183_v19 }
 0x122   : > { %736 = vmatmul.mubr.f32.gmra.mrb[30].mxu0 %v469_v10  ;;  %832 = vmatmul.mubr.f32.gmra.mrb[30].mxu1 %v501_v11 }
 0x123   : > { %v3199_v23 = vrot.slane %v503_v21, %v577_v40 }
 0x124   : > { %2270 = vmatpush1.bf16.msra.mxu1 %v2269_v17 }
 0x1b9   : > { %v647_v24 = vpop.f32.mrb[0].mxu0  ;;  %v743_v25 = vpop.f32.mrb[0].mxu1 }
 0x1ba   : > { %v648_v26 = vadd.f32 %v647_v24, %v3195_v22  ;;  %v649_v27 = vpop.f32.mrb[1].mxu0  ;;  %v3203_v28 = vadd.f32 %v743_v25, %v3195_v22  ;;  %v3205_v29 = vpop.f32.mrb[1].mxu1 }
 0x1bb   : > { %v650_v30 = vadd.f32 %v649_v27, %v3199_v23 }
 0x1bc   : > { %v902_v31 = vmul.f32 0.25, %v648_v26  ;;  %vm838_vm0 = vcmp.ge.f32.partialorder %v648_v26, 0.0 }
 0x1bd   : > { %v903_v32 = vmul.f32 0.25, %v650_v30  ;;  %v653_v33 = vpop.f32.mrb[2].mxu0  ;;  %vm839_vm1 = vcmp.ge.f32.partialorder %v650_v30, 0.0  ;;  %v749_v34 = vpop.f32.mrb[2].mxu1 }
 0x1be   : > { %v654_v35 = vadd.f32 %v653_v33, %v3195_v22  ;;  %v655_v36 = vpop.f32.mrb[3].mxu0  ;;  %v3210_v37 = vadd.f32 %v749_v34, %v3195_v22  ;;  %v751_v38 = vpop.f32.mrb[3].mxu1  ;;  %v966_v43 = vsel %vm838_vm0, %v648_v26, %v902_v31 }
 0x1bf   : > { %v656_v39 = vadd.f32 %v655_v36, %v3199_v23  ;;  %v967_v41 = vsel %vm839_vm1, %v650_v30, %v903_v32  ;;  %v3214_v42 = vadd.f32 %v751_v38, %v3199_v23 }
 0x1c0   : > { %v904_v44 = vmul.f32 0.25, %v654_v35  ;;  %1132 = vmatprep.mubr.f32.mxu1 %v967_v41  ;;  %vm840_vm3 = vcmp.ge.f32.partialorder %v654_v35, 0.0 }
 0x1c1   : > { %v905_v45 = vmul.f32 0.25, %v656_v39  ;;  %v659_v46 = vpop.f32.mrb[4].mxu0  ;;  %1133 = vmatmul.mubr.f32.vlgmr.msra.gmra.mrb[32].mxu1 %v966_v43  ;;  %vm841_vm2 = vcmp.ge.f32.partialorder %v656_v39, 0.0  ;;  %v755_v47 = vpop.f32.mrb[4].mxu1 }
 0x1c2   : > { %v660_v48 = vadd.f32 %v659_v46, %v3195_v22  ;;  %v661_v49 = vpop.f32.mrb[5].mxu0  ;;  %v3218_v50 = vadd.f32 %v755_v47, %v3195_v22  ;;  %v757_v51 = vpop.f32.mrb[5].mxu1  ;;  %v968_v56 = vsel %vm840_vm3, %v654_v35, %v904_v44 }
 0x1c3   : > { %v662_v52 = vadd.f32 %v661_v49, %v3199_v23  ;;  %v969_v53 = vsel %vm841_vm2, %v656_v39, %v905_v45  ;;  %v3222_v54 = vadd.f32 %v757_v51, %v3199_v23 }
 0x1c4   : > { %v906_v55 = vmul.f32 0.25, %v660_v48  ;;  %1137 = vmatprep.mubr.f32.mxu1 %v969_v53  ;;  %vm842_vm5 = vcmp.ge.f32.partialorder %v660_v48, 0.0 }
 0x1c5   : > { %v907_v57 = vmul.f32 0.25, %v662_v52  ;;  %v665_v58 = vpop.f32.mrb[6].mxu0  ;;  %1138 = vmatmul.mubr.f32.gmra.mrb[34].mxu1 %v968_v56  ;;  %vm843_vm4 = vcmp.ge.f32.partialorder %v662_v52, 0.0  ;;  %v761_v59 = vpop.f32.mrb[6].mxu1 }
 0x1c6   : > { %v666_v60 = vadd.f32 %v665_v58, %v3195_v22  ;;  %v667_v61 = vpop.f32.mrb[7].mxu0  ;;  %v3226_v62 = vadd.f32 %v761_v59, %v3195_v22  ;;  %v763_v63 = vpop.f32.mrb[7].mxu1  ;;  %v970_v4 = vsel %vm842_vm5, %v660_v48, %v906_v55 }
 0x1c7   : > { %v668_v0 = vadd.f32 %v667_v61, %v3199_v23  ;;  %v971_v1 = vsel %vm843_vm4, %v662_v52, %v907_v57  ;;  %v3230_v2 = vadd.f32 %v763_v63, %v3199_v23 }
 0x1c8   : > { %v908_v3 = vmul.f32 0.25, %v666_v60  ;;  %1142 = vmatprep.mubr.f32.mxu1 %v971_v1  ;;  %vm844_vm7 = vcmp.ge.f32.partialorder %v666_v60, 0.0 }
 0x1c9   : > { %v909_v5 = vmul.f32 0.25, %v668_v0  ;;  %v671_v6 = vpop.f32.mrb[8].mxu0  ;;  %1143 = vmatmul.mubr.f32.gmra.mrb[36].mxu1 %v970_v4  ;;  %vm845_vm6 = vcmp.ge.f32.partialorder %v668_v0, 0.0  ;;  %v767_v7 = vpop.f32.mrb[8].mxu1 }
 0x1ca   : > { %v672_v8 = vadd.f32 %v671_v6, %v3195_v22  ;;  %v673_v9 = vpop.f32.mrb[9].mxu0  ;;  %v3234_v10 = vadd.f32 %v767_v7, %v3195_v22  ;;  %v769_v11 = vpop.f32.mrb[9].mxu1  ;;  %v972_v16 = vsel %vm844_vm7, %v666_v60, %v908_v3 }
 0x1cb   : > { %v674_v12 = vadd.f32 %v673_v9, %v3199_v23  ;;  %v973_v13 = vsel %vm845_vm6, %v668_v0, %v909_v5  ;;  %v3238_v14 = vadd.f32 %v769_v11, %v3199_v23 }
 0x1cc   : > { %v910_v15 = vmul.f32 0.25, %v672_v8  ;;  %1147 = vmatprep.mubr.f32.mxu1 %v973_v13  ;;  %vm846_vm9 = vcmp.ge.f32.partialorder %v672_v8, 0.0 }
 0x1cd   : > { %v911_v17 = vmul.f32 0.25, %v674_v12  ;;  %v677_v18 = vpop.f32.mrb[10].mxu0  ;;  %1148 = vmatmul.mubr.f32.gmra.mrb[38].mxu1 %v972_v16  ;;  %vm847_vm8 = vcmp.ge.f32.partialorder %v674_v12, 0.0  ;;  %v773_v21 = vpop.f32.mrb[10].mxu1 }
 0x1ce   : > { %v678_v24 = vadd.f32 %v677_v18, %v3195_v22  ;;  %v679_v25 = vpop.f32.mrb[11].mxu0  ;;  %v3242_v26 = vadd.f32 %v773_v21, %v3195_v22  ;;  %v775_v27 = vpop.f32.mrb[11].mxu1  ;;  %v974_v34 = vsel %vm846_vm9, %v672_v8, %v910_v15 }
 0x1cf   : > { %v680_v30 = vadd.f32 %v679_v25, %v3199_v23  ;;  %v975_v31 = vsel %vm847_vm8, %v674_v12, %v911_v17  ;;  %v3246_v32 = vadd.f32 %v775_v27, %v3199_v23 }
 0x1d0   : > { %v912_v33 = vmul.f32 0.25, %v678_v24  ;;  %1152 = vmatprep.mubr.f32.mxu1 %v975_v31  ;;  %vm848_vm11 = vcmp.ge.f32.partialorder %v678_v24, 0.0 }
 0x1d1   : > { %v913_v35 = vmul.f32 0.25, %v680_v30  ;;  %v683_v36 = vpop.f32.mrb[12].mxu0  ;;  %1153 = vmatmul.mubr.f32.gmra.mrb[40].mxu1 %v974_v34  ;;  %vm849_vm10 = vcmp.ge.f32.partialorder %v680_v30, 0.0  ;;  %v779_v38 = vpop.f32.mrb[12].mxu1 }
 0x1d2   : > { %v684_v39 = vadd.f32 %v683_v36, %v3195_v22  ;;  %v685_v41 = vpop.f32.mrb[13].mxu0  ;;  %v3250_v43 = vadd.f32 %v779_v38, %v3195_v22  ;;  %v781_v44 = vpop.f32.mrb[13].mxu1  ;;  %v976_v49 = vsel %vm848_vm11, %v678_v24, %v912_v33 }
 0x1d3   : > { %v686_v45 = vadd.f32 %v685_v41, %v3199_v23  ;;  %v977_v46 = vsel %vm849_vm10, %v680_v30, %v913_v35  ;;  %v3254_v47 = vadd.f32 %v781_v44, %v3199_v23 }
 0x1d4   : > { %v914_v48 = vmul.f32 0.25, %v684_v39  ;;  %1157 = vmatprep.mubr.f32.mxu1 %v977_v46  ;;  %vm850_vm13 = vcmp.ge.f32.partialorder %v684_v39, 0.0 }
 0x1d5   : > { %v915_v51 = vmul.f32 0.25, %v686_v45  ;;  %v689_v52 = vpop.f32.mrb[14].mxu0  ;;  %1158 = vmatmul.mubr.f32.gmra.mrb[42].mxu1 %v976_v49  ;;  %vm851_vm12 = vcmp.ge.f32.partialorder %v686_v45, 0.0  ;;  %v785_v53 = vpop.f32.mrb[14].mxu1 }
 0x1d6   : > { %v690_v55 = vadd.f32 %v689_v52, %v3195_v22  ;;  %v691_v56 = vpop.f32.mrb[15].mxu0  ;;  %v3258_v57 = vadd.f32 %v785_v53, %v3195_v22  ;;  %v787_v58 = vpop.f32.mrb[15].mxu1  ;;  %v978_v0 = vsel %vm850_vm13, %v684_v39, %v914_v48 }
 0x1d7   : > { %v692_v59 = vadd.f32 %v691_v56, %v3199_v23  ;;  %v979_v60 = vsel %vm851_vm12, %v686_v45, %v915_v51  ;;  %v3262_v61 = vadd.f32 %v787_v58, %v3199_v23 }
 0x1d8   : > { %v916_v63 = vmul.f32 0.25, %v690_v55  ;;  %1162 = vmatprep.mubr.f32.mxu1 %v979_v60  ;;  %vm852_vm15 = vcmp.ge.f32.partialorder %v690_v55, 0.0 }
 0x1d9   : > { %v917_v1 = vmul.f32 0.25, %v692_v59  ;;  %v695_v3 = vpop.f32.mrb[16].mxu0  ;;  %1163 = vmatmul.mubr.f32.gmra.mrb[44].mxu1 %v978_v0  ;;  %vm853_vm14 = vcmp.ge.f32.partialorder %v692_v59, 0.0  ;;  %v791_v4 = vpop.f32.mrb[16].mxu1 }
 0x1da   : > { %v696_v5 = vadd.f32 %v695_v3, %v3195_v22  ;;  %v697_v6 = vpop.f32.mrb[17].mxu0  ;;  %v3266_v7 = vadd.f32 %v791_v4, %v3195_v22  ;;  %v793_v8 = vpop.f32.mrb[17].mxu1  ;;  %v980_v15 = vsel %vm852_vm15, %v690_v55, %v916_v63 }
 0x1db   : > { %v698_v9 = vadd.f32 %v697_v6, %v3199_v23  ;;  %v981_v11 = vsel %vm853_vm14, %v692_v59, %v917_v1  ;;  %v3270_v12 = vadd.f32 %v793_v8, %v3199_v23 }
 0x1dc   : > { %v918_v13 = vmul.f32 0.25, %v696_v5  ;;  %1167 = vmatprep.mubr.f32.mxu1 %v981_v11  ;;  %vm854_vm1 = vcmp.ge.f32.partialorder %v696_v5, 0.0 }
 0x1dd   : > { %v919_v16 = vmul.f32 0.25, %v698_v9  ;;  %v701_v17 = vpop.f32.mrb[18].mxu0  ;;  %1168 = vmatmul.mubr.f32.gmra.mrb[46].mxu1 %v980_v15  ;;  %vm855_vm0 = vcmp.ge.f32.partialorder %v698_v9, 0.0  ;;  %v797_v18 = vpop.f32.mrb[18].mxu1 }
 0x1de   : > { %v702_v21 = vadd.f32 %v701_v17, %v3195_v22  ;;  %v703_v24 = vpop.f32.mrb[19].mxu0  ;;  %v3274_v25 = vadd.f32 %v797_v18, %v3195_v22  ;;  %v799_v27 = vpop.f32.mrb[19].mxu1  ;;  %v982_v35 = vsel %vm854_vm1, %v696_v5, %v918_v13  ;;  %vm873_vm1 = vcmp.ge.f32.partialorder %v3214_v42, 0.0 }
 0x1df   : > { %v704_v30 = vadd.f32 %v703_v24, %v3199_v23  ;;  %v983_v31 = vsel %vm855_vm0, %v698_v9, %v919_v16  ;;  %v3278_v33 = vadd.f32 %v799_v27, %v3199_v23 }
 0x1e0   : > { %v920_v34 = vmul.f32 0.25, %v702_v21  ;;  %1172 = vmatprep.mubr.f32.mxu1 %v983_v31  ;;  %vm856_vm3 = vcmp.ge.f32.partialorder %v702_v21, 0.0 }
 0x1e1   : > { %v921_v36 = vmul.f32 0.25, %v704_v30  ;;  %v707_v38 = vpop.f32.mrb[20].mxu0  ;;  %1173 = vmatmul.mubr.f32.gmra.mrb[48].mxu1 %v982_v35  ;;  %vm857_vm2 = vcmp.ge.f32.partialorder %v704_v30, 0.0  ;;  %v803_v39 = vpop.f32.mrb[20].mxu1 }
 0x1e2   : > { %v708_v41 = vadd.f32 %v707_v38, %v3195_v22  ;;  %v709_v44 = vpop.f32.mrb[21].mxu0  ;;  %v3282_v45 = vadd.f32 %v803_v39, %v3195_v22  ;;  %v805_v46 = vpop.f32.mrb[21].mxu1  ;;  %v984_v53 = vsel %vm856_vm3, %v702_v21, %v920_v34  ;;  %vm875_vm3 = vcmp.ge.f32.partialorder %v3222_v54, 0.0 }
 0x1e3   : > { %v710_v48 = vadd.f32 %v709_v44, %v3199_v23  ;;  %v985_v49 = vsel %vm857_vm2, %v704_v30, %v921_v36  ;;  %v3286_v51 = vadd.f32 %v805_v46, %v3199_v23  ;;  %vm870_vm2 = vcmp.ge.f32.partialorder %v3203_v28, 0.0 }
 0x1e4   : > { %v922_v52 = vmul.f32 0.25, %v708_v41  ;;  %1177 = vmatprep.mubr.f32.mxu1 %v985_v49  ;;  %vm858_vm5 = vcmp.ge.f32.partialorder %v708_v41, 0.0 }
 0x1e5   : > { %v923_v55 = vmul.f32 0.25, %v710_v48  ;;  %v713_v56 = vpop.f32.mrb[22].mxu0  ;;  %1178 = vmatmul.mubr.f32.gmra.mrb[50].mxu1 %v984_v53  ;;  %vm859_vm4 = vcmp.ge.f32.partialorder %v710_v48, 0.0  ;;  %v809_v58 = vpop.f32.mrb[22].mxu1 }
 0x1e6   : > { %v714_v59 = vadd.f32 %v713_v56, %v3195_v22  ;;  %v715_v60 = vpop.f32.mrb[23].mxu0  ;;  %v3290_v63 = vadd.f32 %v809_v58, %v3195_v22  ;;  %v811_v0 = vpop.f32.mrb[23].mxu1  ;;  %v986_v6 = vsel %vm858_vm5, %v708_v41, %v922_v52  ;;  %vm877_vm5 = vcmp.ge.f32.partialorder %v3230_v2, 0.0 }
 0x1e7   : > { %v716_v1 = vadd.f32 %v715_v60, %v3199_v23  ;;  %v987_v3 = vsel %vm859_vm4, %v710_v48, %v923_v55  ;;  %v3294_v4 = vadd.f32 %v811_v0, %v3199_v23  ;;  %vm872_vm4 = vcmp.ge.f32.partialorder %v3210_v37, 0.0 }
 0x1e8   : > { %v924_v5 = vmul.f32 0.25, %v714_v59  ;;  %1182 = vmatprep.mubr.f32.mxu1 %v987_v3  ;;  %vm860_vm7 = vcmp.ge.f32.partialorder %v714_v59, 0.0 }
 0x1e9   : > { %v925_v8 = vmul.f32 0.25, %v716_v1  ;;  %v719_v9 = vpop.f32.mrb[24].mxu0  ;;  %1183 = vmatmul.mubr.f32.gmra.mrb[52].mxu1 %v986_v6  ;;  %vm861_vm6 = vcmp.ge.f32.partialorder %v716_v1, 0.0  ;;  %v815_v11 = vpop.f32.mrb[24].mxu1 }
 0x1ea   : > { %v720_v13 = vadd.f32 %v719_v9, %v3195_v22  ;;  %v721_v15 = vpop.f32.mrb[25].mxu0  ;;  %v3298_v16 = vadd.f32 %v815_v11, %v3195_v22  ;;  %v817_v17 = vpop.f32.mrb[25].mxu1  ;;  %v988_v30 = vsel %vm860_vm7, %v714_v59, %v924_v5  ;;  %v746_v5 = vadd.f32 %v3205_v29, %v3199_v23 }
 0x1eb   : > { %v722_v18 = vadd.f32 %v721_v15, %v3199_v23  ;;  %v989_v21 = vsel %vm861_vm6, %v716_v1, %v925_v8  ;;  %v3302_v24 = vadd.f32 %v817_v17, %v3199_v23  ;;  %vm874_vm6 = vcmp.ge.f32.partialorder %v3218_v50, 0.0 }
 0x1ec   : > { %v926_v27 = vmul.f32 0.25, %v720_v13  ;;  %1187 = vmatprep.mubr.f32.mxu1 %v989_v21  ;;  %vm862_vm9 = vcmp.ge.f32.partialorder %v720_v13, 0.0  ;;  %vm871_vm14 = vcmp.ge.f32.partialorder %v746_v5, 0.0  ;;  %vm879_vm7 = vcmp.ge.f32.partialorder %v3238_v14, 0.0 }
 0x1ed   : > { %v927_v31 = vmul.f32 0.25, %v722_v18  ;;  %v725_v34 = vpop.f32.mrb[26].mxu0  ;;  %1188 = vmatmul.mubr.f32.gmra.mrb[54].mxu1 %v988_v30  ;;  %vm863_vm8 = vcmp.ge.f32.partialorder %v722_v18, 0.0  ;;  %v821_v35 = vpop.f32.mrb[26].mxu1 }
 0x1ee   : > { %v726_v36 = vadd.f32 %v725_v34, %v3195_v22  ;;  %v727_v38 = vpop.f32.mrb[27].mxu0  ;;  %v3306_v39 = vadd.f32 %v821_v35, %v3195_v22  ;;  %v823_v41 = vpop.f32.mrb[27].mxu1  ;;  %v990_v52 = vsel %vm862_vm9, %v720_v13, %v926_v27  ;;  %v1390_v27 = vld [vmem:[%s2999_s20 + $0x8] sm:$0xff]  ;;  %vm881_vm9 = vcmp.ge.f32.partialorder %v3246_v32, 0.0 }
 0x1ef   : > { %v728_v44 = vadd.f32 %v727_v38, %v3199_v23  ;;  %v991_v46 = vsel %vm863_vm8, %v722_v18, %v927_v31  ;;  %v3310_v48 = vadd.f32 %v823_v41, %v3199_v23  ;;  %v935_v31 = vmul.f32 0.25, %v746_v5  ;;  %v1389_v38 = vld [vmem:[%s2999_s20] sm:$0xff]  ;;  %v1391_v41 = vld [vmem:[%s2999_s20 + $0x10] sm:$0xff] }
 0x1f0   : > { %v928_v49 = vmul.f32 0.25, %v726_v36  ;;  %1192 = vmatprep.mubr.f32.mxu1 %v991_v46  ;;  %vm864_vm11 = vcmp.ge.f32.partialorder %v726_v36, 0.0  ;;  %vm876_vm8 = vcmp.ge.f32.partialorder %v3226_v62, 0.0 }
 0x1f1   : > { %v929_v53 = vmul.f32 0.25, %v728_v44  ;;  %v731_v55 = vpop.f32.mrb[28].mxu0  ;;  %1193 = vmatmul.mubr.f32.gmra.mrb[56].mxu1 %v990_v52  ;;  %vm865_vm10 = vcmp.ge.f32.partialorder %v728_v44, 0.0  ;;  %v827_v56 = vpop.f32.mrb[28].mxu1 }
 0x1f2   : > { %v732_v58 = vadd.f32 %v731_v55, %v3195_v22  ;;  %v733_v59 = vpop.f32.mrb[29].mxu0  ;;  %v3314_v60 = vadd.f32 %v827_v56, %v3195_v22  ;;  %v829_v0 = vpop.f32.mrb[29].mxu1  ;;  %v992_v9 = vsel %vm864_vm11, %v726_v36, %v928_v49  ;;  %v1392_v36 = vld [vmem:[%s2999_s20 + $0x18] sm:$0xff]  ;;  %v1393_v55 = vld [vmem:[%s2999_s20 + $0x20] sm:$0xff]  ;;  %v1395_v56 = vld [vmem:[%s2999_s20 + $0x30] sm:$0xff]  ;;  %vm883_vm11 = vcmp.ge.f32.partialorder %v3254_v47, 0.0 }
 0x1f3   : > { %v734_v1 = vadd.f32 %v733_v59, %v3199_v23  ;;  %v993_v3 = vsel %vm865_vm10, %v728_v44, %v929_v53  ;;  %v3320_v6 = vadd.f32 %v829_v0, %v3199_v23  ;;  %v1396_v49 = vld [vmem:[%s2999_s20 + $0x38] sm:$0xff]  ;;  %v2273_v53 = vpack.c.bf16 %v1391_v41, %v1389_v38  ;;  %v1401_v41 = vld [vmem:[%s2999_s20 + $0x60] sm:$0xff] }
 0x1f4   : > { %v930_v8 = vmul.f32 0.25, %v732_v58  ;;  %1197 = vmatprep.mubr.f32.mxu1 %v993_v3  ;;  %vm866_vm13 = vcmp.ge.f32.partialorder %v732_v58, 0.0  ;;  %v937_v59 = vmul.f32 0.25, %v3214_v42  ;;  %vm878_vm10 = vcmp.ge.f32.partialorder %v3234_v10, 0.0 }
 0x1f5   : > { %v931_v11 = vmul.f32 0.25, %v734_v1  ;;  %v737_v13 = vpop.f32.mrb[30].mxu0  ;;  %1198 = vmatmul.mubr.f32.gmra.mrb[58].mxu1 %v992_v9  ;;  %vm867_vm12 = vcmp.ge.f32.partialorder %v734_v1, 0.0  ;;  %v833_v15 = vpop.f32.mrb[30].mxu1  ;;  %v934_v9 = vmul.f32 0.25, %v3203_v28 }
 0x1f6   : > { %v738_v17 = vadd.f32 %v737_v13, %v3195_v22  ;;  %v739_v18 = vpop.f32.mrb[31].mxu0  ;;  %v3324_v29 = vadd.f32 %v833_v15, %v3195_v22  ;;  %v835_v21 = vpop.f32.mrb[31].mxu1  ;;  %v994_v46 = vsel %vm866_vm13, %v732_v58, %v930_v8  ;;  %v1394_v22 = vld [vmem:[%s2999_s20 + $0x28] sm:$0xff]  ;;  %v1400_v8 = vld [vmem:[%s2999_s20 + $0x58] sm:$0xff]  ;;  %v2277_v13 = vpack.c.bf16 %v1395_v56, %v1393_v55  ;;  %v1397_v15 = vld [vmem:[%s2999_s20 + $0x40] sm:$0xff] }
 0x1f7   : > { %v740_v30 = vadd.f32 %v739_v18, %v3199_v23  ;;  %v995_v34 = vsel %vm867_vm12, %v734_v1, %v931_v11  ;;  %v3329_v35 = vadd.f32 %v835_v21, %v3199_v23  ;;  %v2271_v23 = vpack.c.bf16 %v1392_v36, %v1390_v27  ;;  %v1398_v58 = vld [vmem:[%s2999_s20 + $0x48] sm:$0xff]  ;;  %v1399_v18 = vld [vmem:[%s2999_s20 + $0x50] sm:$0xff]  ;;  %v1405_v55 = vld [vmem:[%s2999_s20 + $0x80] sm:$0xff] }
 0x1f8   : > { %v932_v44 = vmul.f32 0.25, %v738_v17  ;;  %1202 = vmatprep.mubr.f32.mxu1 %v995_v34  ;;  %vm868_vm0 = vcmp.ge.f32.partialorder %v738_v17, 0.0  ;;  %v999_v1 = vsel %vm871_vm14, %v746_v5, %v935_v31  ;;  %v2275_v3 = vpack.c.bf16 %v1396_v49, %v1394_v22  ;;  %v1406_v22 = vld [vmem:[%s2999_s20 + $0x88] sm:$0xff] }
 0x1f9   : > { %v933_v52 = vmul.f32 0.25, %v740_v30  ;;  %1203 = vmatmul.mubr.f32.gmra.mrb[60].mxu1 %v994_v46  ;;  %vm869_vm15 = vcmp.ge.f32.partialorder %v740_v30, 0.0  ;;  %2272 = vmatprep.subr.bf16.mxu0 %v2271_v23  ;;  %v2279_v5 = vpack.c.bf16 %v1400_v8, %v1398_v58  ;;  %v939_v21 = vmul.f32 0.25, %v3222_v54 }
 0x1fa   : > { %v996_v11 = vsel %vm868_vm0, %v738_v17, %v932_v44  ;;  %2274 = vmatpush1.bf16.msra.mxu0 %v2273_v53  ;;  %v1001_v27 = vsel %vm873_vm1, %v3214_v42, %v937_v59  ;;  %v1402_v17 = vld [vmem:[%s2999_s20 + $0x68] sm:$0xff]  ;;  %v936_v31 = vmul.f32 0.25, %v3210_v37  ;;  %v998_v34 = vsel %vm870_vm2, %v3203_v28, %v934_v9  ;;  %v1403_v42 = vld [vmem:[%s2999_s20 + $0x70] sm:$0xff]  ;;  %v1408_v28 = vld [vmem:[%s2999_s20 + $0x98] sm:$0xff] }
 0x1fb   : > { %v997_v0 = vsel %vm869_vm15, %v740_v30, %v933_v52  ;;  %2276 = vmatprep.subr.bf16.mxu0 %v2275_v3  ;;  %v1404_v30 = vld [vmem:[%s2999_s20 + $0x78] sm:$0xff]  ;;  %v2281_v36 = vpack.c.bf16 %v1399_v18, %v1397_v15  ;;  %v941_v44 = vmul.f32 0.25, %v3230_v2  ;;  %v1003_v46 = vsel %vm875_vm3, %v3222_v54, %v939_v21  ;;  %v1407_v54 = vld [vmem:[%s2999_s20 + $0x90] sm:$0xff]  ;;  %v1409_v9 = vld [vmem:[%s2999_s20 + $0xa0] sm:$0xff] }
 0x1fc   : > { %1207 = vmatprep.mubr.f32.mxu1 %v997_v0  ;;  %v2283_v38 = vpack.c.bf16 %v1404_v30, %v1402_v17  ;;  %v938_v49 = vmul.f32 0.25, %v3218_v50  ;;  %v1000_v52 = vsel %vm872_vm4, %v3210_v37, %v936_v31  ;;  %v2285_v23 = vpack.c.bf16 %v1403_v42, %v1401_v41  ;;  %v1410_v0 = vld [vmem:[%s2999_s20 + $0xa8] sm:$0xff]  ;;  %v1412_v37 = vld [vmem:[%s2999_s20 + $0xb8] sm:$0xff]  ;;  %v1413_v17 = vld [vmem:[%s2999_s20 + $0xc0] sm:$0xff] }
 0x1fd   : > { %1208 = vmatmul.mubr.f32.gmra.mrb[62].mxu1 %v996_v11  ;;  %v2287_v53 = vpack.c.bf16 %v1408_v28, %v1406_v22  ;;  %v943_v56 = vmul.f32 0.25, %v3238_v14  ;;  %v1005_v59 = vsel %vm877_vm5, %v3230_v2, %v941_v44  ;;  %v2289_v58 = vpack.c.bf16 %v1407_v54, %v1405_v55  ;;  %v1411_v2 = vld [vmem:[%s2999_s20 + $0xb0] sm:$0xff]  ;;  %v1417_v44 = vld [vmem:[%s2999_s20 + $0xe0] sm:$0xff] }
 0x1fe   : > { %1212 = vmatprep.mubr.f32.mxu1 %v999_v1  ;;  %2278 = vmatpush1.bf16.msra.mxu0 %v2277_v13  ;;  %v940_v1 = vmul.f32 0.25, %v3226_v62  ;;  %v1002_v3 = vsel %vm874_vm6, %v3218_v50, %v938_v49  ;;  %v2291_v8 = vpack.c.bf16 %v1412_v37, %v1410_v0  ;;  %v945_v11 = vmul.f32 0.25, %v3246_v32  ;;  %v1416_v50 = vld [vmem:[%s2999_s20 + $0xd8] sm:$0xff] }
 0x1ff   : > { %2280 = vmatprep.subr.bf16.mxu0 %v2279_v5  ;;  %v1007_v13 = vsel %vm879_vm7, %v3238_v14, %v943_v56  ;;  %v1414_v5 = vld [vmem:[%s2999_s20 + $0xc8] sm:$0xff]  ;;  %v942_v15 = vmul.f32 0.25, %v3234_v10  ;;  %v2293_v21 = vpack.c.bf16 %v1411_v2, %v1409_v9  ;;  %v1415_v14 = vld [vmem:[%s2999_s20 + $0xd0] sm:$0xff]  ;;  %v947_v30 = vmul.f32 0.25, %v3254_v47 }
 0x200   : > { %v1004_v18 = vsel %vm876_vm8, %v3226_v62, %v940_v1  ;;  %v1009_v31 = vsel %vm881_vm9, %v3246_v32, %v945_v11  ;;  %v1420_v62 = vld [vmem:[%s2999_s20 + $0xf8] sm:$0xff]  ;;  %vm880_vm12 = vcmp.ge.f32.partialorder %v3242_v26, 0.0  ;;  %v2297_v41 = vpack.c.bf16 %v1415_v14, %v1413_v17 }
 0x201   : > { %1213 = vmatmul.mubr.f32.gmra.mrb[64].mxu1 %v998_v34  ;;  %v1418_v34 = vld [vmem:[%s2999_s20 + $0xe8] sm:$0xff]  ;;  %v949_v32 = vmul.f32 0.25, %v3262_v61  ;;  %v1011_v22 = vsel %vm883_vm11, %v3254_v47, %v947_v30  ;;  %v946_v28 = vmul.f32 0.25, %v3250_v43  ;;  %vm885_vm13 = vcmp.ge.f32.partialorder %v3262_v61, 0.0 }
 0x202   : > { %1217 = vmatprep.mubr.f32.mxu1 %v1001_v27  ;;  %2282 = vmatpush1.bf16.msra.mxu0 %v2281_v36  ;;  %v2295_v27 = vpack.c.bf16 %v1416_v50, %v1414_v5  ;;  %v944_v36 = vmul.f32 0.25, %v3242_v26  ;;  %v2299_v42 = vpack.c.bf16 %v1420_v62, %v1418_v34  ;;  %vm882_vm14 = vcmp.ge.f32.partialorder %v3250_v43, 0.0 }
 0x203   : > { %2284 = vmatprep.subr.bf16.mxu0 %v2283_v38  ;;  %v1006_v38 = vsel %vm878_vm10, %v3234_v10, %v942_v15  ;;  %v1010_v47 = vsel %vm882_vm14, %v3250_v43, %v946_v28  ;;  %vm887_vm15 = vcmp.ge.f32.partialorder %v3270_v12, 0.0  ;;  %vm884_vm0 = vcmp.ge.f32.partialorder %v3258_v57, 0.0 }
 0x204   : > { %v1008_v10 = vsel %vm880_vm12, %v3242_v26, %v944_v36  ;;  %v2681_v26 = vmov 0.0   ;;  %v953_v55 = vmul.f32 0.25, %v3278_v33  ;;  %vm889_vm1 = vcmp.ge.f32.partialorder %v3278_v33, 0.0 }
 0x205   : > { %1218 = vmatmul.mubr.f32.gmra.mrb[66].mxu1 %v1000_v52  ;;  %v951_v52 = vmul.f32 0.25, %v3270_v12  ;;  %1496 = vmatprep.mubr.f32.mxu0 %v2681_v26  ;;  %vm886_vm2 = vcmp.ge.f32.partialorder %v3266_v7, 0.0  ;;  %v955_v43 = vmul.f32 0.25, %v3286_v51  ;;  %v952_v0 = vmul.f32 0.25, %v3274_v25 }
 0x206   : > { %1222 = vmatprep.mubr.f32.mxu1 %v1003_v46  ;;  %2286 = vmatpush1.bf16.msra.mxu0 %v2285_v23  ;;  %v1419_v46 = vld [vmem:[%s2999_s20 + $0xf0] sm:$0xff]  ;;  %v1013_v23 = vsel %vm885_vm13, %v3262_v61, %v949_v32  ;;  %v950_v61 = vmul.f32 0.25, %v3266_v7  ;;  %vm891_vm3 = vcmp.ge.f32.partialorder %v3286_v51, 0.0  ;;  %vm888_vm4 = vcmp.ge.f32.partialorder %v3274_v25, 0.0 }
 0x207   : > { %2288 = vmatprep.subr.bf16.mxu0 %v2287_v53  ;;  %v2301_v49 = vpack.c.bf16 %v1419_v46, %v1417_v44  ;;  %v948_v53 = vmul.f32 0.25, %v3258_v57  ;;  %v1015_v54 = vsel %vm887_vm15, %v3270_v12, %v951_v52  ;;  %v1019_v12 = vsel %vm891_vm3, %v3286_v51, %v955_v43 }
 0x208   : > { %v1014_v37 = vsel %vm886_vm2, %v3266_v7, %v950_v61  ;;  %v954_v1 = vmul.f32 0.25, %v3282_v45  ;;  %vm893_vm5 = vcmp.ge.f32.partialorder %v3294_v4, 0.0  ;;  %vm890_vm6 = vcmp.ge.f32.partialorder %v3282_v45, 0.0 }
 0x209   : > { %1223 = vmatmul.mubr.f32.gmra.mrb[68].mxu1 %v1002_v3  ;;  %v1012_v56 = vsel %vm884_vm0, %v3258_v57, %v948_v53  ;;  %v957_v57 = vmul.f32 0.25, %v3294_v4  ;;  %v1016_v3 = vsel %vm888_vm4, %v3274_v25, %v952_v0  ;;  %v959_v7 = vmul.f32 0.25, %v3302_v24 }
 0x20a   : > { %1227 = vmatprep.mubr.f32.mxu1 %v1005_v59  ;;  %2290 = vmatpush1.bf16.msra.mxu0 %v2289_v58  ;;  %v1017_v59 = vsel %vm889_vm1, %v3278_v33, %v953_v55  ;;  %v956_v58 = vmul.f32 0.25, %v3290_v63  ;;  %vm895_vm7 = vcmp.ge.f32.partialorder %v3302_v24, 0.0  ;;  %vm892_vm8 = vcmp.ge.f32.partialorder %v3290_v63, 0.0 }
 0x20b   : > { %2292 = vmatprep.subr.bf16.mxu0 %v2291_v8  ;;  %v1021_v33 = vsel %vm893_vm5, %v3294_v4, %v957_v57  ;;  %v1018_v8 = vsel %vm890_vm6, %v3282_v45, %v954_v1  ;;  %v961_v25 = vmul.f32 0.25, %v3310_v48  ;;  %v1023_v51 = vsel %vm895_vm7, %v3302_v24, %v959_v7 }
 0x20c   : > { %v958_v9 = vmul.f32 0.25, %v3298_v16  ;;  %v1020_v2 = vsel %vm892_vm8, %v3290_v63, %v956_v58  ;;  %vm897_vm9 = vcmp.ge.f32.partialorder %v3310_v48, 0.0  ;;  %vm894_vm10 = vcmp.ge.f32.partialorder %v3298_v16, 0.0 }
 0x20d   : > { %1228 = vmatmul.mubr.f32.gmra.mrb[70].mxu1 %v1004_v18  ;;  %v963_v45 = vmul.f32 0.25, %v3320_v6  ;;  %v1025_v4 = vsel %vm897_vm9, %v3310_v48, %v961_v25  ;;  %v960_v11 = vmul.f32 0.25, %v3306_v39  ;;  %vm899_vm11 = vcmp.ge.f32.partialorder %v3320_v6, 0.0 }
 0x20e   : > { %1232 = vmatprep.mubr.f32.mxu1 %v1007_v13  ;;  %2294 = vmatpush1.bf16.msra.mxu0 %v2293_v21  ;;  %v1022_v13 = vsel %vm894_vm10, %v3298_v16, %v958_v9  ;;  %vm896_vm12 = vcmp.ge.f32.partialorder %v3306_v39, 0.0  ;;  %v965_v63 = vmul.f32 0.25, %v3329_v35  ;;  %v962_v5 = vmul.f32 0.25, %v3314_v60 }
 0x20f   : > { %2296 = vmatprep.subr.bf16.mxu0 %v2295_v27  ;;  %v1027_v24 = vsel %vm899_vm11, %v3320_v6, %v963_v45  ;;  %v1024_v50 = vsel %vm896_vm12, %v3306_v39, %v960_v11  ;;  %vm901_vm13 = vcmp.ge.f32.partialorder %v3329_v35, 0.0  ;;  %vm898_vm14 = vcmp.ge.f32.partialorder %v3314_v60, 0.0  ;;  %v3458_v39 = vld [vmem:[%s3188_s17 + $0x2] ss:$0 sm:$0xff] }
 0x210   : > { %v1029_v16 = vsel %vm901_vm13, %v3329_v35, %v965_v63  ;;  %v964_v48 = vmul.f32 0.25, %v3324_v29  ;;  %v1026_v15 = vsel %vm898_vm14, %v3314_v60, %v962_v5  ;;  %vm900_vm15 = vcmp.ge.f32.partialorder %v3324_v29, 0.0 }
 0x211   : > { %1233 = vmatmul.mubr.f32.gmra.mrb[72].mxu1 %v1006_v38 }
 0x212   : > { %1237 = vmatprep.mubr.f32.mxu1 %v1009_v31  ;;  %2298 = vmatpush1.bf16.msra.mxu0 %v2297_v41  ;;  %v1028_v6 = vsel %vm900_vm15, %v3324_v29, %v964_v48 }
 0x213   : > { %2300 = vmatprep.subr.bf16.mxu0 %v2299_v42 }
 0x215   : > { %1238 = vmatmul.mubr.f32.gmra.mrb[74].mxu1 %v1008_v10 }
 0x216   : > { %1242 = vmatprep.mubr.f32.mxu1 %v1011_v22  ;;  %2302 = vmatpush1.bf16.msra.mxu0 %v2301_v49 }
 0x219   : > { %1243 = vmatmul.mubr.f32.gmra.mrb[76].mxu1 %v1010_v47 }
 0x21a   : > { %1247 = vmatprep.mubr.f32.mxu1 %v1013_v23 }
 0x21d   : > { %1248 = vmatmul.mubr.f32.gmra.mrb[78].mxu1 %v1012_v56 }
 0x21e   : > { %1252 = vmatprep.mubr.f32.mxu1 %v1015_v54 }
 0x221   : > { %1253 = vmatmul.mubr.f32.gmra.mrb[80].mxu1 %v1014_v37 }
 0x222   : > { %1257 = vmatprep.mubr.f32.mxu1 %v1017_v59 }
 0x225   : > { %1258 = vmatmul.mubr.f32.gmra.mrb[82].mxu1 %v1016_v3 }
 0x226   : > { %1262 = vmatprep.mubr.f32.mxu1 %v1019_v12 }
 0x229   : > { %1263 = vmatmul.mubr.f32.gmra.mrb[84].mxu1 %v1018_v8 }
 0x22a   : > { %1267 = vmatprep.mubr.f32.mxu1 %v1021_v33 }
 0x22d   : > { %1268 = vmatmul.mubr.f32.gmra.mrb[86].mxu1 %v1020_v2 }
 0x22e   : > { %1272 = vmatprep.mubr.f32.mxu1 %v1023_v51 }
 0x231   : > { %1273 = vmatmul.mubr.f32.gmra.mrb[88].mxu1 %v1022_v13 }
 0x232   : > { %1277 = vmatprep.mubr.f32.mxu1 %v1025_v4 }
 0x235   : > { %1278 = vmatmul.mubr.f32.gmra.mrb[90].mxu1 %v1024_v50 }
 0x236   : > { %1282 = vmatprep.mubr.f32.mxu1 %v1027_v24 }
 0x239   : > { %1283 = vmatmul.mubr.f32.gmra.mrb[92].mxu1 %v1026_v15 }
 0x23a   : > { %1287 = vmatprep.mubr.f32.mxu1 %v1029_v16 }
 0x23d   : > { %1288 = vmatmul.mubr.f32.gmra.mrb[94].mxu1 %v1028_v6 }
 0x294   : > { %v1134_v18 = vpop.f32.mrb[32].mxu1 }
 0x295   : > { %v1135_v21 = vadd.f32 %v3458_v39, %v1134_v18  ;;  %v1136_v27 = vpop.f32.mrb[33].mxu1 }
 0x297   : > { %vm1293_vm0 = vcmp.ge.f32.partialorder %v1135_v21, 0.0  ;;  %v1325_v17 = vmul.f32 0.25, %v1135_v21 }
 0x298   : > { %v1139_v35 = vpop.f32.mrb[34].mxu1 }
 0x299   : > { %v1357_v14 = vsel %vm1293_vm0, %v1135_v21, %v1325_v17  ;;  %v1140_v30 = vadd.f32 %v3458_v39, %v1139_v35  ;;  %v1141_v60 = vpop.f32.mrb[35].mxu1 }
 0x29a   : > { %1497 = vmatmul.mubr.f32.vlgmr.msra.gmra.mrb[32].mxu0 %v1357_v14 }
 0x29b   : > { %v1326_v31 = vmul.f32 0.25, %v1140_v30  ;;  %1502 = vmatprep.mubr.f32.mxu0 %v2681_v26  ;;  %vm1294_vm1 = vcmp.ge.f32.partialorder %v1140_v30, 0.0 }
 0x29c   : > { %v1144_v29 = vpop.f32.mrb[36].mxu1 }
 0x29d   : > { %v1145_v34 = vadd.f32 %v3458_v39, %v1144_v29  ;;  %v1146_v62 = vpop.f32.mrb[37].mxu1  ;;  %v1358_v36 = vsel %vm1294_vm1, %v1140_v30, %v1326_v31 }
 0x29e   : > { %1503 = vmatmul.mubr.f32.gmra.mrb[34].mxu0 %v1358_v36 }
 0x29f   : > { %v1327_v38 = vmul.f32 0.25, %v1145_v34  ;;  %1508 = vmatprep.mubr.f32.mxu0 %v2681_v26  ;;  %vm1295_vm2 = vcmp.ge.f32.partialorder %v1145_v34, 0.0 }
 0x2a0   : > { %v1149_v41 = vpop.f32.mrb[38].mxu1 }
 0x2a1   : > { %v1150_v42 = vadd.f32 %v3458_v39, %v1149_v41  ;;  %v1151_v44 = vpop.f32.mrb[39].mxu1  ;;  %v1359_v46 = vsel %vm1295_vm2, %v1145_v34, %v1327_v38 }
 0x2a2   : > { %1509 = vmatmul.mubr.f32.gmra.mrb[36].mxu0 %v1359_v46 }
 0x2a3   : > { %v1328_v32 = vmul.f32 0.25, %v1150_v42  ;;  %1514 = vmatprep.mubr.f32.mxu0 %v2681_v26  ;;  %vm1296_vm3 = vcmp.ge.f32.partialorder %v1150_v42, 0.0 }
 0x2a4   : > { %v1154_v22 = vpop.f32.mrb[40].mxu1 }
 0x2a5   : > { %v1155_v28 = vadd.f32 %v3458_v39, %v1154_v22  ;;  %v1156_v10 = vpop.f32.mrb[41].mxu1  ;;  %v1360_v49 = vsel %vm1296_vm3, %v1150_v42, %v1328_v32 }
 0x2a6   : > { %1515 = vmatmul.mubr.f32.gmra.mrb[38].mxu0 %v1360_v49 }
 0x2a7   : > { %v1329_v52 = vmul.f32 0.25, %v1155_v28  ;;  %1520 = vmatprep.mubr.f32.mxu0 %v2681_v26  ;;  %vm1297_vm4 = vcmp.ge.f32.partialorder %v1155_v28, 0.0 }
 0x2a8   : > { %v1159_v23 = vpop.f32.mrb[42].mxu1 }
 0x2a9   : > { %v1160_v53 = vadd.f32 %v3458_v39, %v1159_v23  ;;  %v1161_v47 = vpop.f32.mrb[43].mxu1  ;;  %v1361_v55 = vsel %vm1297_vm4, %v1155_v28, %v1329_v52 }
 0x2aa   : > { %1521 = vmatmul.mubr.f32.gmra.mrb[40].mxu0 %v1361_v55 }
 0x2ab   : > { %v1330_v54 = vmul.f32 0.25, %v1160_v53  ;;  %1526 = vmatprep.mubr.f32.mxu0 %v2681_v26  ;;  %vm1298_vm5 = vcmp.ge.f32.partialorder %v1160_v53, 0.0 }
 0x2ac   : > { %v1164_v61 = vpop.f32.mrb[44].mxu1 }
 0x2ad   : > { %v1165_v56 = vadd.f32 %v3458_v39, %v1164_v61  ;;  %v1166_v43 = vpop.f32.mrb[45].mxu1  ;;  %v1362_v59 = vsel %vm1298_vm5, %v1160_v53, %v1330_v54 }
 0x2ae   : > { %1527 = vmatmul.mubr.f32.gmra.mrb[42].mxu0 %v1362_v59 }
 0x2af   : > { %v1331_v0 = vmul.f32 0.25, %v1165_v56  ;;  %1532 = vmatprep.mubr.f32.mxu0 %v2681_v26  ;;  %vm1299_vm6 = vcmp.ge.f32.partialorder %v1165_v56, 0.0 }
 0x2b0   : > { %v1169_v37 = vpop.f32.mrb[46].mxu1 }
 0x2b1   : > { %v1170_v57 = vadd.f32 %v3458_v39, %v1169_v37  ;;  %v1171_v12 = vpop.f32.mrb[47].mxu1  ;;  %v1363_v1 = vsel %vm1299_vm6, %v1165_v56, %v1331_v0 }
 0x2b2   : > { %1533 = vmatmul.mubr.f32.gmra.mrb[44].mxu0 %v1363_v1 }
 0x2b3   : > { %v1332_v3 = vmul.f32 0.25, %v1170_v57  ;;  %1538 = vmatprep.mubr.f32.mxu0 %v2681_v26  ;;  %vm1300_vm7 = vcmp.ge.f32.partialorder %v1170_v57, 0.0 }
 0x2b4   : > { %v1174_v7 = vpop.f32.mrb[48].mxu1 }
 0x2b5   : > { %v1175_v33 = vadd.f32 %v3458_v39, %v1174_v7  ;;  %v1176_v58 = vpop.f32.mrb[49].mxu1  ;;  %v1364_v8 = vsel %vm1300_vm7, %v1170_v57, %v1332_v3 }
 0x2b6   : > { %1539 = vmatmul.mubr.f32.gmra.mrb[46].mxu0 %v1364_v8 }
 0x2b7   : > { %v1333_v25 = vmul.f32 0.25, %v1175_v33  ;;  %1544 = vmatprep.mubr.f32.mxu0 %v2681_v26  ;;  %vm1301_vm8 = vcmp.ge.f32.partialorder %v1175_v33, 0.0 }
 0x2b8   : > { %v1179_v51 = vpop.f32.mrb[50].mxu1 }
 0x2b9   : > { %v1180_v9 = vadd.f32 %v3458_v39, %v1179_v51  ;;  %v1181_v2 = vpop.f32.mrb[51].mxu1  ;;  %v1365_v45 = vsel %vm1301_vm8, %v1175_v33, %v1333_v25 }
 0x2ba   : > { %1545 = vmatmul.mubr.f32.gmra.mrb[48].mxu0 %v1365_v45 }
 0x2bb   : > { %v1334_v4 = vmul.f32 0.25, %v1180_v9  ;;  %1550 = vmatprep.mubr.f32.mxu0 %v2681_v26  ;;  %vm1302_vm9 = vcmp.ge.f32.partialorder %v1180_v9, 0.0 }
 0x2bc   : > { %v1184_v11 = vpop.f32.mrb[52].mxu1 }
 0x2bd   : > { %v1185_v13 = vadd.f32 %v3458_v39, %v1184_v11  ;;  %v1186_v63 = vpop.f32.mrb[53].mxu1  ;;  %v1366_v24 = vsel %vm1302_vm9, %v1180_v9, %v1334_v4 }
 0x2be   : > { %1551 = vmatmul.mubr.f32.gmra.mrb[50].mxu0 %v1366_v24 }
 0x2bf   : > { %v1335_v5 = vmul.f32 0.25, %v1185_v13  ;;  %1556 = vmatprep.mubr.f32.mxu0 %v2681_v26  ;;  %vm1303_vm10 = vcmp.ge.f32.partialorder %v1185_v13, 0.0 }
 0x2c0   : > { %v1189_v50 = vpop.f32.mrb[54].mxu1 }
 0x2c1   : > { %v1190_v16 = vadd.f32 %v3458_v39, %v1189_v50  ;;  %v1191_v48 = vpop.f32.mrb[55].mxu1  ;;  %v1367_v15 = vsel %vm1303_vm10, %v1185_v13, %v1335_v5 }
 0x2c2   : > { %1557 = vmatmul.mubr.f32.gmra.mrb[52].mxu0 %v1367_v15 }
 0x2c3   : > { %v1336_v6 = vmul.f32 0.25, %v1190_v16  ;;  %1562 = vmatprep.mubr.f32.mxu0 %v2681_v26  ;;  %vm1304_vm11 = vcmp.ge.f32.partialorder %v1190_v16, 0.0 }
 0x2c4   : > { %v1194_v18 = vpop.f32.mrb[56].mxu1 }
 0x2c5   : > { %v1195_v21 = vadd.f32 %v3458_v39, %v1194_v18  ;;  %v1196_v27 = vpop.f32.mrb[57].mxu1  ;;  %v1368_v17 = vsel %vm1304_vm11, %v1190_v16, %v1336_v6 }
 0x2c6   : > { %1563 = vmatmul.mubr.f32.gmra.mrb[54].mxu0 %v1368_v17 }
 0x2c7   : > { %v1337_v35 = vmul.f32 0.25, %v1195_v21  ;;  %1568 = vmatprep.mubr.f32.mxu0 %v2681_v26  ;;  %vm1305_vm12 = vcmp.ge.f32.partialorder %v1195_v21, 0.0 }
 0x2c8   : > { %v1199_v14 = vpop.f32.mrb[58].mxu1 }
 0x2c9   : > { %v1200_v30 = vadd.f32 %v3458_v39, %v1199_v14  ;;  %v1201_v60 = vpop.f32.mrb[59].mxu1  ;;  %v1369_v31 = vsel %vm1305_vm12, %v1195_v21, %v1337_v35 }
 0x2ca   : > { %1569 = vmatmul.mubr.f32.gmra.mrb[56].mxu0 %v1369_v31 }
 0x2cb   : > { %v1338_v29 = vmul.f32 0.25, %v1200_v30  ;;  %1574 = vmatprep.mubr.f32.mxu0 %v2681_v26  ;;  %vm1306_vm13 = vcmp.ge.f32.partialorder %v1200_v30, 0.0 }
 0x2cc   : > { %v1204_v34 = vpop.f32.mrb[60].mxu1 }
 0x2cd   : > { %v1205_v62 = vadd.f32 %v3458_v39, %v1204_v34  ;;  %v1206_v36 = vpop.f32.mrb[61].mxu1  ;;  %v1370_v38 = vsel %vm1306_vm13, %v1200_v30, %v1338_v29 }
 0x2ce   : > { %1575 = vmatmul.mubr.f32.gmra.mrb[58].mxu0 %v1370_v38 }
 0x2cf   : > { %v1339_v41 = vmul.f32 0.25, %v1205_v62  ;;  %1580 = vmatprep.mubr.f32.mxu0 %v2681_v26  ;;  %vm1307_vm14 = vcmp.ge.f32.partialorder %v1205_v62, 0.0 }
 0x2d0   : > { %v1209_v42 = vpop.f32.mrb[62].mxu1 }
 0x2d1   : > { %v1210_v44 = vadd.f32 %v3458_v39, %v1209_v42  ;;  %v1211_v46 = vpop.f32.mrb[63].mxu1  ;;  %v1371_v32 = vsel %vm1307_vm14, %v1205_v62, %v1339_v41 }
 0x2d2   : > { %1581 = vmatmul.mubr.f32.gmra.mrb[60].mxu0 %v1371_v32 }
 0x2d3   : > { %v1340_v22 = vmul.f32 0.25, %v1210_v44  ;;  %1586 = vmatprep.mubr.f32.mxu0 %v2681_v26  ;;  %vm1308_vm15 = vcmp.ge.f32.partialorder %v1210_v44, 0.0 }
 0x2d4   : > { %v1214_v28 = vpop.f32.mrb[64].mxu1 }
 0x2d5   : > { %v1215_v10 = vadd.f32 %v3458_v39, %v1214_v28  ;;  %v1216_v49 = vpop.f32.mrb[65].mxu1  ;;  %v1372_v52 = vsel %vm1308_vm15, %v1210_v44, %v1340_v22 }
 0x2d6   : > { %1587 = vmatmul.mubr.f32.gmra.mrb[62].mxu0 %v1372_v52 }
 0x2d7   : > { %v1341_v23 = vmul.f32 0.25, %v1215_v10  ;;  %1592 = vmatprep.mubr.f32.mxu0 %v2681_v26  ;;  %vm1309_vm0 = vcmp.ge.f32.partialorder %v1215_v10, 0.0 }
 0x2d8   : > { %v1219_v53 = vpop.f32.mrb[66].mxu1 }
 0x2d9   : > { %v1220_v47 = vadd.f32 %v3458_v39, %v1219_v53  ;;  %v1221_v55 = vpop.f32.mrb[67].mxu1  ;;  %v1373_v54 = vsel %vm1309_vm0, %v1215_v10, %v1341_v23 }
 0x2da   : > { %1593 = vmatmul.mubr.f32.gmra.mrb[64].mxu0 %v1373_v54 }
 0x2db   : > { %v1342_v61 = vmul.f32 0.25, %v1220_v47  ;;  %1598 = vmatprep.mubr.f32.mxu0 %v2681_v26  ;;  %vm1310_vm1 = vcmp.ge.f32.partialorder %v1220_v47, 0.0 }
 0x2dc   : > { %v1224_v56 = vpop.f32.mrb[68].mxu1 }
 0x2dd   : > { %v1225_v43 = vadd.f32 %v3458_v39, %v1224_v56  ;;  %v1226_v59 = vpop.f32.mrb[69].mxu1  ;;  %v1374_v0 = vsel %vm1310_vm1, %v1220_v47, %v1342_v61 }
 0x2de   : > { %1599 = vmatmul.mubr.f32.gmra.mrb[66].mxu0 %v1374_v0 }
 0x2df   : > { %v1343_v37 = vmul.f32 0.25, %v1225_v43  ;;  %1604 = vmatprep.mubr.f32.mxu0 %v2681_v26  ;;  %vm1311_vm2 = vcmp.ge.f32.partialorder %v1225_v43, 0.0 }
 0x2e0   : > { %v1229_v57 = vpop.f32.mrb[70].mxu1 }
 0x2e1   : > { %v1230_v12 = vadd.f32 %v3458_v39, %v1229_v57  ;;  %v1231_v1 = vpop.f32.mrb[71].mxu1  ;;  %v1375_v3 = vsel %vm1311_vm2, %v1225_v43, %v1343_v37 }
 0x2e2   : > { %1605 = vmatmul.mubr.f32.gmra.mrb[68].mxu0 %v1375_v3 }
 0x2e3   : > { %v1344_v7 = vmul.f32 0.25, %v1230_v12  ;;  %1610 = vmatprep.mubr.f32.mxu0 %v2681_v26  ;;  %vm1312_vm3 = vcmp.ge.f32.partialorder %v1230_v12, 0.0 }
 0x2e4   : > { %v1234_v33 = vpop.f32.mrb[72].mxu1 }
 0x2e5   : > { %v1235_v58 = vadd.f32 %v3458_v39, %v1234_v33  ;;  %v1236_v8 = vpop.f32.mrb[73].mxu1  ;;  %v1376_v25 = vsel %vm1312_vm3, %v1230_v12, %v1344_v7 }
 0x2e6   : > { %1611 = vmatmul.mubr.f32.gmra.mrb[70].mxu0 %v1376_v25  ;;  %v505_v8 = vld [vmem:[%s3188_s17 + $0x3] sm:$0x3] }
 0x2e7   : > { %v1345_v51 = vmul.f32 0.25, %v1235_v58  ;;  %1616 = vmatprep.mubr.f32.mxu0 %v2681_v26  ;;  %vm1313_vm4 = vcmp.ge.f32.partialorder %v1235_v58, 0.0  ;;  %v3526_v25 = vrot.slane %v505_v8, %v573_v20 }
 0x2e8   : > { %v1239_v9 = vpop.f32.mrb[74].mxu1 }
 0x2e9   : > { %v1240_v2 = vadd.f32 %v3458_v39, %v1239_v9  ;;  %v1241_v45 = vpop.f32.mrb[75].mxu1  ;;  %v1377_v4 = vsel %vm1313_vm4, %v1235_v58, %v1345_v51  ;;  %v3530_v51 = vrot.slane %v505_v8, %v577_v40 }
 0x2ea   : > { %1617 = vmatmul.mubr.f32.gmra.mrb[72].mxu0 %v1377_v4 }
 0x2eb   : > { %v1346_v11 = vmul.f32 0.25, %v1240_v2  ;;  %1622 = vmatprep.mubr.f32.mxu0 %v2681_v26  ;;  %vm1314_vm5 = vcmp.ge.f32.partialorder %v1240_v2, 0.0 }
 0x2ec   : > { %v1244_v13 = vpop.f32.mrb[76].mxu1 }
 0x2ed   : > { %v1245_v63 = vadd.f32 %v3458_v39, %v1244_v13  ;;  %v1246_v24 = vpop.f32.mrb[77].mxu1  ;;  %v1378_v5 = vsel %vm1314_vm5, %v1240_v2, %v1346_v11 }
 0x2ee   : > { %1623 = vmatmul.mubr.f32.gmra.mrb[74].mxu0 %v1378_v5 }
 0x2ef   : > { %v1347_v50 = vmul.f32 0.25, %v1245_v63  ;;  %1628 = vmatprep.mubr.f32.mxu0 %v2681_v26  ;;  %vm1315_vm6 = vcmp.ge.f32.partialorder %v1245_v63, 0.0 }
 0x2f0   : > { %v1249_v16 = vpop.f32.mrb[78].mxu1 }
 0x2f1   : > { %v1250_v48 = vadd.f32 %v3458_v39, %v1249_v16  ;;  %v1251_v15 = vpop.f32.mrb[79].mxu1  ;;  %v1379_v6 = vsel %vm1315_vm6, %v1245_v63, %v1347_v50 }
 0x2f2   : > { %1629 = vmatmul.mubr.f32.gmra.mrb[76].mxu0 %v1379_v6 }
 0x2f3   : > { %v1348_v18 = vmul.f32 0.25, %v1250_v48  ;;  %1634 = vmatprep.mubr.f32.mxu0 %v2681_v26  ;;  %vm1316_vm7 = vcmp.ge.f32.partialorder %v1250_v48, 0.0 }
 0x2f4   : > { %v1254_v21 = vpop.f32.mrb[80].mxu1 }
 0x2f5   : > { %v1255_v27 = vadd.f32 %v3458_v39, %v1254_v21  ;;  %v1256_v17 = vpop.f32.mrb[81].mxu1  ;;  %v1380_v35 = vsel %vm1316_vm7, %v1250_v48, %v1348_v18 }
 0x2f6   : > { %1635 = vmatmul.mubr.f32.gmra.mrb[78].mxu0 %v1380_v35 }
 0x2f7   : > { %v1349_v14 = vmul.f32 0.25, %v1255_v27  ;;  %1640 = vmatprep.mubr.f32.mxu0 %v2681_v26  ;;  %vm1317_vm8 = vcmp.ge.f32.partialorder %v1255_v27, 0.0 }
 0x2f8   : > { %v1259_v30 = vpop.f32.mrb[82].mxu1 }
 0x2f9   : > { %v1260_v60 = vadd.f32 %v3458_v39, %v1259_v30  ;;  %v1261_v31 = vpop.f32.mrb[83].mxu1  ;;  %v1381_v29 = vsel %vm1317_vm8, %v1255_v27, %v1349_v14 }
 0x2fa   : > { %1641 = vmatmul.mubr.f32.gmra.mrb[80].mxu0 %v1381_v29 }
 0x2fb   : > { %v1350_v34 = vmul.f32 0.25, %v1260_v60  ;;  %1646 = vmatprep.mubr.f32.mxu0 %v2681_v26  ;;  %vm1318_vm9 = vcmp.ge.f32.partialorder %v1260_v60, 0.0 }
 0x2fc   : > { %v1264_v62 = vpop.f32.mrb[84].mxu1 }
 0x2fd   : > { %v1265_v36 = vadd.f32 %v3458_v39, %v1264_v62  ;;  %v1266_v38 = vpop.f32.mrb[85].mxu1  ;;  %v1382_v41 = vsel %vm1318_vm9, %v1260_v60, %v1350_v34 }
 0x2fe   : > { %1647 = vmatmul.mubr.f32.gmra.mrb[82].mxu0 %v1382_v41 }
 0x2ff   : > { %v1351_v42 = vmul.f32 0.25, %v1265_v36  ;;  %1652 = vmatprep.mubr.f32.mxu0 %v2681_v26  ;;  %vm1319_vm10 = vcmp.ge.f32.partialorder %v1265_v36, 0.0 }
 0x300   : > { %v1269_v44 = vpop.f32.mrb[86].mxu1 }
 0x301   : > { %v1270_v46 = vadd.f32 %v3458_v39, %v1269_v44  ;;  %v1271_v32 = vpop.f32.mrb[87].mxu1  ;;  %v1383_v22 = vsel %vm1319_vm10, %v1265_v36, %v1351_v42 }
 0x302   : > { %1653 = vmatmul.mubr.f32.gmra.mrb[84].mxu0 %v1383_v22 }
 0x303   : > { %v1352_v28 = vmul.f32 0.25, %v1270_v46  ;;  %1658 = vmatprep.mubr.f32.mxu0 %v2681_v26  ;;  %vm1320_vm11 = vcmp.ge.f32.partialorder %v1270_v46, 0.0 }
 0x304   : > { %v1274_v10 = vpop.f32.mrb[88].mxu1 }
 0x305   : > { %v1275_v49 = vadd.f32 %v3458_v39, %v1274_v10  ;;  %v1276_v52 = vpop.f32.mrb[89].mxu1  ;;  %v1384_v23 = vsel %vm1320_vm11, %v1270_v46, %v1352_v28 }
 0x306   : > { %1659 = vmatmul.mubr.f32.gmra.mrb[86].mxu0 %v1384_v23 }
 0x307   : > { %v1353_v53 = vmul.f32 0.25, %v1275_v49  ;;  %1664 = vmatprep.mubr.f32.mxu0 %v2681_v26  ;;  %vm1321_vm12 = vcmp.ge.f32.partialorder %v1275_v49, 0.0 }
 0x308   : > { %v1279_v47 = vpop.f32.mrb[90].mxu1 }
 0x309   : > { %v1280_v55 = vadd.f32 %v3458_v39, %v1279_v47  ;;  %v1281_v54 = vpop.f32.mrb[91].mxu1  ;;  %v1385_v61 = vsel %vm1321_vm12, %v1275_v49, %v1353_v53 }
 0x30a   : > { %1665 = vmatmul.mubr.f32.gmra.mrb[88].mxu0 %v1385_v61 }
 0x30b   : > { %v1354_v56 = vmul.f32 0.25, %v1280_v55  ;;  %1670 = vmatprep.mubr.f32.mxu0 %v2681_v26  ;;  %vm1322_vm13 = vcmp.ge.f32.partialorder %v1280_v55, 0.0 }
 0x30c   : > { %v1284_v43 = vpop.f32.mrb[92].mxu1 }
 0x30d   : > { %v1285_v59 = vadd.f32 %v3458_v39, %v1284_v43  ;;  %v1286_v0 = vpop.f32.mrb[93].mxu1  ;;  %v1386_v37 = vsel %vm1322_vm13, %v1280_v55, %v1354_v56 }
 0x30e   : > { %1671 = vmatmul.mubr.f32.gmra.mrb[90].mxu0 %v1386_v37 }
 0x30f   : > { %v1355_v57 = vmul.f32 0.25, %v1285_v59  ;;  %1676 = vmatprep.mubr.f32.mxu0 %v2681_v26  ;;  %vm1323_vm14 = vcmp.ge.f32.partialorder %v1285_v59, 0.0 }
 0x310   : > { %v1289_v12 = vpop.f32.mrb[94].mxu1 }
 0x311   : > { %v1290_v1 = vadd.f32 %v3458_v39, %v1289_v12  ;;  %v1291_v3 = vpop.f32.mrb[95].mxu1  ;;  %v1387_v7 = vsel %vm1323_vm14, %v1285_v59, %v1355_v57 }
 0x312   : > { %1677 = vmatmul.mubr.f32.gmra.mrb[92].mxu0 %v1387_v7 }
 0x313   : > { %v1356_v33 = vmul.f32 0.25, %v1290_v1  ;;  %1682 = vmatprep.mubr.f32.mxu0 %v2681_v26  ;;  %vm1324_vm15 = vcmp.ge.f32.partialorder %v1290_v1, 0.0 }
 0x315   : > { %v1388_v58 = vsel %vm1324_vm15, %v1290_v1, %v1356_v33 }
 0x316   : > { %1683 = vmatmul.mubr.f32.gmra.mrb[94].mxu0 %v1388_v58 }
 0x36d   : > { %v1498_v39 = vpop.f32.mrb[32].mxu0 }
 0x36e   : > { %v1499_v9 = vadd.f32 %v1498_v39, %v3526_v25  ;;  %v1500_v2 = vpop.f32.mrb[33].mxu0 }
 0x36f   : > { %v1501_v45 = vadd.f32 %v1500_v2, %v3530_v51 }
 0x370   : > { %1721 = vst [vmem:[%s3535_s12] sm:$0xff] %v1499_v9 }
 0x371   : > { %v1689_v20 = vsub.f32 %v1501_v45, %v1499_v9  ;;  %1722 = vst [vmem:[%s3535_s12 + $0x8] sm:$0xff] %v1501_v45  ;;  %v1504_v26 = vpop.f32.mrb[34].mxu0 }
 0x372   : > { %v1505_v19 = vadd.f32 %v1504_v26, %v3526_v25  ;;  %v1506_v40 = vpop.f32.mrb[35].mxu0 }
 0x373   : > { %v1785_v4 = vmul.f32 %v1689_v20, %v1689_v20  ;;  %v1507_v11 = vadd.f32 %v1506_v40, %v3530_v51 }
 0x374   : > { %1723 = vst [vmem:[%s3535_s12 + $0x10] sm:$0xff] %v1505_v19 }
 0x375   : > { %v1817_v13 = vmul.f32 0.5, %v1785_v4  ;;  %v1690_v63 = vsub.f32 %v1507_v11, %v1505_v19  ;;  %1724 = vst [vmem:[%s3535_s12 + $0x18] sm:$0xff] %v1507_v11  ;;  %v1510_v24 = vpop.f32.mrb[36].mxu0 }
 0x376   : > { %v1511_v5 = vadd.f32 %v1510_v24, %v3526_v25  ;;  %v1512_v50 = vpop.f32.mrb[37].mxu0 }
 0x377   : > { %1849 = vst [vmem:[%s3545_s0] sm:$0xff] %v1817_v13  ;;  %v1786_v16 = vmul.f32 %v1690_v63, %v1690_v63  ;;  %v1513_v48 = vadd.f32 %v1512_v50, %v3530_v51 }
 0x378   : > { %1725 = vst [vmem:[%s3535_s12 + $0x20] sm:$0xff] %v1511_v5 }
 0x379   : > { %v1818_v15 = vmul.f32 0.5, %v1786_v16  ;;  %v1691_v6 = vsub.f32 %v1513_v48, %v1511_v5  ;;  %1726 = vst [vmem:[%s3535_s12 + $0x28] sm:$0xff] %v1513_v48  ;;  %v1516_v18 = vpop.f32.mrb[38].mxu0 }
 0x37a   : > { %v1517_v21 = vadd.f32 %v1516_v18, %v3526_v25  ;;  %v1518_v27 = vpop.f32.mrb[39].mxu0 }
 0x37b   : > { %1850 = vst [vmem:[%s3545_s0 + $0x8] sm:$0xff] %v1818_v15  ;;  %v1787_v17 = vmul.f32 %v1691_v6, %v1691_v6  ;;  %v1519_v35 = vadd.f32 %v1518_v27, %v3530_v51 }
 0x37c   : > { %1727 = vst [vmem:[%s3535_s12 + $0x30] sm:$0xff] %v1517_v21 }
 0x37d   : > { %v1819_v14 = vmul.f32 0.5, %v1787_v17  ;;  %v1692_v30 = vsub.f32 %v1519_v35, %v1517_v21  ;;  %1728 = vst [vmem:[%s3535_s12 + $0x38] sm:$0xff] %v1519_v35  ;;  %v1522_v60 = vpop.f32.mrb[40].mxu0 }
 0x37e   : > { %v1523_v31 = vadd.f32 %v1522_v60, %v3526_v25  ;;  %v1524_v29 = vpop.f32.mrb[41].mxu0 }
 0x37f   : > { %1851 = vst [vmem:[%s3545_s0 + $0x10] sm:$0xff] %v1819_v14  ;;  %v1788_v34 = vmul.f32 %v1692_v30, %v1692_v30  ;;  %v1525_v62 = vadd.f32 %v1524_v29, %v3530_v51 }
 0x380   : > { %1729 = vst [vmem:[%s3535_s12 + $0x40] sm:$0xff] %v1523_v31 }
 0x381   : > { %v1820_v36 = vmul.f32 0.5, %v1788_v34  ;;  %v1693_v38 = vsub.f32 %v1525_v62, %v1523_v31  ;;  %1730 = vst [vmem:[%s3535_s12 + $0x48] sm:$0xff] %v1525_v62  ;;  %v1528_v41 = vpop.f32.mrb[42].mxu0 }
 0x382   : > { %v1529_v42 = vadd.f32 %v1528_v41, %v3526_v25  ;;  %v1530_v44 = vpop.f32.mrb[43].mxu0 }
 0x383   : > { %1852 = vst [vmem:[%s3545_s0 + $0x18] sm:$0xff] %v1820_v36  ;;  %v1789_v46 = vmul.f32 %v1693_v38, %v1693_v38  ;;  %v1531_v32 = vadd.f32 %v1530_v44, %v3530_v51 }
 0x384   : > { %1731 = vst [vmem:[%s3535_s12 + $0x50] sm:$0xff] %v1529_v42 }
 0x385   : > { %v1821_v22 = vmul.f32 0.5, %v1789_v46  ;;  %v1694_v28 = vsub.f32 %v1531_v32, %v1529_v42  ;;  %1732 = vst [vmem:[%s3535_s12 + $0x58] sm:$0xff] %v1531_v32  ;;  %v1534_v10 = vpop.f32.mrb[44].mxu0 }
 0x386   : > { %v1535_v49 = vadd.f32 %v1534_v10, %v3526_v25  ;;  %v1536_v52 = vpop.f32.mrb[45].mxu0 }
 0x387   : > { %1853 = vst [vmem:[%s3545_s0 + $0x20] sm:$0xff] %v1821_v22  ;;  %v1790_v23 = vmul.f32 %v1694_v28, %v1694_v28  ;;  %v1537_v53 = vadd.f32 %v1536_v52, %v3530_v51 }
 0x388   : > { %1733 = vst [vmem:[%s3535_s12 + $0x60] sm:$0xff] %v1535_v49 }
 0x389   : > { %v1822_v47 = vmul.f32 0.5, %v1790_v23  ;;  %v1695_v55 = vsub.f32 %v1537_v53, %v1535_v49  ;;  %1734 = vst [vmem:[%s3535_s12 + $0x68] sm:$0xff] %v1537_v53  ;;  %v1540_v54 = vpop.f32.mrb[46].mxu0 }
 0x38a   : > { %v1541_v61 = vadd.f32 %v1540_v54, %v3526_v25  ;;  %v1542_v56 = vpop.f32.mrb[47].mxu0 }
 0x38b   : > { %1854 = vst [vmem:[%s3545_s0 + $0x28] sm:$0xff] %v1822_v47  ;;  %v1791_v43 = vmul.f32 %v1695_v55, %v1695_v55  ;;  %v1543_v59 = vadd.f32 %v1542_v56, %v3530_v51 }
 0x38c   : > { %1735 = vst [vmem:[%s3535_s12 + $0x70] sm:$0xff] %v1541_v61 }
 0x38d   : > { %v1823_v0 = vmul.f32 0.5, %v1791_v43  ;;  %v1696_v37 = vsub.f32 %v1543_v59, %v1541_v61  ;;  %1736 = vst [vmem:[%s3535_s12 + $0x78] sm:$0xff] %v1543_v59  ;;  %v1546_v57 = vpop.f32.mrb[48].mxu0 }
 0x38e   : > { %v1547_v12 = vadd.f32 %v1546_v57, %v3526_v25  ;;  %v1548_v1 = vpop.f32.mrb[49].mxu0 }
 0x38f   : > { %1855 = vst [vmem:[%s3545_s0 + $0x30] sm:$0xff] %v1823_v0  ;;  %v1792_v3 = vmul.f32 %v1696_v37, %v1696_v37  ;;  %v1549_v7 = vadd.f32 %v1548_v1, %v3530_v51 }
 0x390   : > { %1737 = vst [vmem:[%s3535_s12 + $0x80] sm:$0xff] %v1547_v12 }
 0x391   : > { %v1824_v33 = vmul.f32 0.5, %v1792_v3  ;;  %v1697_v58 = vsub.f32 %v1549_v7, %v1547_v12  ;;  %1738 = vst [vmem:[%s3535_s12 + $0x88] sm:$0xff] %v1549_v7  ;;  %v1552_v8 = vpop.f32.mrb[50].mxu0 }
 0x392   : > { %v1553_v39 = vadd.f32 %v1552_v8, %v3526_v25  ;;  %v1554_v9 = vpop.f32.mrb[51].mxu0 }
 0x393   : > { %1856 = vst [vmem:[%s3545_s0 + $0x38] sm:$0xff] %v1824_v33  ;;  %v1793_v2 = vmul.f32 %v1697_v58, %v1697_v58  ;;  %v1555_v45 = vadd.f32 %v1554_v9, %v3530_v51 }
 0x394   : > { %1739 = vst [vmem:[%s3535_s12 + $0x90] sm:$0xff] %v1553_v39 }
 0x395   : > { %v1825_v20 = vmul.f32 0.5, %v1793_v2  ;;  %v1698_v26 = vsub.f32 %v1555_v45, %v1553_v39  ;;  %1740 = vst [vmem:[%s3535_s12 + $0x98] sm:$0xff] %v1555_v45  ;;  %v1558_v19 = vpop.f32.mrb[52].mxu0 }
 0x396   : > { %v1559_v40 = vadd.f32 %v1558_v19, %v3526_v25  ;;  %v1560_v4 = vpop.f32.mrb[53].mxu0 }
 0x397   : > { %1857 = vst [vmem:[%s3545_s0 + $0x40] sm:$0xff] %v1825_v20  ;;  %v1794_v11 = vmul.f32 %v1698_v26, %v1698_v26  ;;  %v1561_v13 = vadd.f32 %v1560_v4, %v3530_v51 }
 0x398   : > { %1741 = vst [vmem:[%s3535_s12 + $0xa0] sm:$0xff] %v1559_v40 }
 0x399   : > { %v1826_v63 = vmul.f32 0.5, %v1794_v11  ;;  %v1699_v24 = vsub.f32 %v1561_v13, %v1559_v40  ;;  %1742 = vst [vmem:[%s3535_s12 + $0xa8] sm:$0xff] %v1561_v13  ;;  %v1564_v5 = vpop.f32.mrb[54].mxu0 }
 0x39a   : > { %v1565_v50 = vadd.f32 %v1564_v5, %v3526_v25  ;;  %v1566_v16 = vpop.f32.mrb[55].mxu0 }
 0x39b   : > { %1858 = vst [vmem:[%s3545_s0 + $0x48] sm:$0xff] %v1826_v63  ;;  %v1795_v48 = vmul.f32 %v1699_v24, %v1699_v24  ;;  %v1567_v15 = vadd.f32 %v1566_v16, %v3530_v51 }
 0x39c   : > { %1743 = vst [vmem:[%s3535_s12 + $0xb0] sm:$0xff] %v1565_v50 }
 0x39d   : > { %v1827_v6 = vmul.f32 0.5, %v1795_v48  ;;  %v1700_v18 = vsub.f32 %v1567_v15, %v1565_v50  ;;  %1744 = vst [vmem:[%s3535_s12 + $0xb8] sm:$0xff] %v1567_v15  ;;  %v1570_v21 = vpop.f32.mrb[56].mxu0 }
 0x39e   : > { %v1571_v27 = vadd.f32 %v1570_v21, %v3526_v25  ;;  %v1572_v17 = vpop.f32.mrb[57].mxu0 }
 0x39f   : > { %1859 = vst [vmem:[%s3545_s0 + $0x50] sm:$0xff] %v1827_v6  ;;  %v1796_v35 = vmul.f32 %v1700_v18, %v1700_v18  ;;  %v1573_v14 = vadd.f32 %v1572_v17, %v3530_v51 }
 0x3a0   : > { %1745 = vst [vmem:[%s3535_s12 + $0xc0] sm:$0xff] %v1571_v27 }
 0x3a1   : > { %v1828_v30 = vmul.f32 0.5, %v1796_v35  ;;  %v1701_v60 = vsub.f32 %v1573_v14, %v1571_v27  ;;  %1746 = vst [vmem:[%s3535_s12 + $0xc8] sm:$0xff] %v1573_v14  ;;  %v1576_v31 = vpop.f32.mrb[58].mxu0 }
 0x3a2   : > { %v1577_v29 = vadd.f32 %v1576_v31, %v3526_v25  ;;  %v1578_v34 = vpop.f32.mrb[59].mxu0 }
 0x3a3   : > { %1860 = vst [vmem:[%s3545_s0 + $0x58] sm:$0xff] %v1828_v30  ;;  %v1797_v62 = vmul.f32 %v1701_v60, %v1701_v60  ;;  %v1579_v36 = vadd.f32 %v1578_v34, %v3530_v51 }
 0x3a4   : > { %1747 = vst [vmem:[%s3535_s12 + $0xd0] sm:$0xff] %v1577_v29 }
 0x3a5   : > { %v1829_v38 = vmul.f32 0.5, %v1797_v62  ;;  %v1702_v41 = vsub.f32 %v1579_v36, %v1577_v29  ;;  %1748 = vst [vmem:[%s3535_s12 + $0xd8] sm:$0xff] %v1579_v36  ;;  %v1582_v42 = vpop.f32.mrb[60].mxu0 }
 0x3a6   : > { %v1583_v44 = vadd.f32 %v1582_v42, %v3526_v25  ;;  %v1584_v46 = vpop.f32.mrb[61].mxu0 }
 0x3a7   : > { %1861 = vst [vmem:[%s3545_s0 + $0x60] sm:$0xff] %v1829_v38  ;;  %v1798_v32 = vmul.f32 %v1702_v41, %v1702_v41  ;;  %v1585_v22 = vadd.f32 %v1584_v46, %v3530_v51 }
 0x3a8   : > { %1749 = vst [vmem:[%s3535_s12 + $0xe0] sm:$0xff] %v1583_v44 }
 0x3a9   : > { %v1830_v28 = vmul.f32 0.5, %v1798_v32  ;;  %v1703_v10 = vsub.f32 %v1585_v22, %v1583_v44  ;;  %1750 = vst [vmem:[%s3535_s12 + $0xe8] sm:$0xff] %v1585_v22  ;;  %v1588_v49 = vpop.f32.mrb[62].mxu0 }
 0x3aa   : > { %v1589_v52 = vadd.f32 %v1588_v49, %v3526_v25  ;;  %v1590_v23 = vpop.f32.mrb[63].mxu0 }
 0x3ab   : > { %1862 = vst [vmem:[%s3545_s0 + $0x68] sm:$0xff] %v1830_v28  ;;  %v1799_v53 = vmul.f32 %v1703_v10, %v1703_v10  ;;  %v1591_v47 = vadd.f32 %v1590_v23, %v3530_v51 }
 0x3ac   : > { %1751 = vst [vmem:[%s3535_s12 + $0xf0] sm:$0xff] %v1589_v52 }
 0x3ad   : > { %v1831_v55 = vmul.f32 0.5, %v1799_v53  ;;  %v1704_v54 = vsub.f32 %v1591_v47, %v1589_v52  ;;  %1752 = vst [vmem:[%s3535_s12 + $0xf8] sm:$0xff] %v1591_v47  ;;  %v1594_v61 = vpop.f32.mrb[64].mxu0 }
 0x3ae   : > { %v1595_v56 = vadd.f32 %v1594_v61, %v3526_v25  ;;  %v1596_v43 = vpop.f32.mrb[65].mxu0 }
 0x3af   : > { %1863 = vst [vmem:[%s3545_s0 + $0x70] sm:$0xff] %v1831_v55  ;;  %v1800_v59 = vmul.f32 %v1704_v54, %v1704_v54  ;;  %v1597_v0 = vadd.f32 %v1596_v43, %v3530_v51 }
 0x3b0   : > { %1753 = vst [vmem:[%s3535_s12 + $0x100] sm:$0xff] %v1595_v56 }
 0x3b1   : > { %v1832_v37 = vmul.f32 0.5, %v1800_v59  ;;  %v1705_v57 = vsub.f32 %v1597_v0, %v1595_v56  ;;  %1754 = vst [vmem:[%s3535_s12 + $0x108] sm:$0xff] %v1597_v0  ;;  %v1600_v12 = vpop.f32.mrb[66].mxu0 }
 0x3b2   : > { %v1601_v1 = vadd.f32 %v1600_v12, %v3526_v25  ;;  %v1602_v3 = vpop.f32.mrb[67].mxu0 }
 0x3b3   : > { %1864 = vst [vmem:[%s3545_s0 + $0x78] sm:$0xff] %v1832_v37  ;;  %v1801_v7 = vmul.f32 %v1705_v57, %v1705_v57  ;;  %v1603_v33 = vadd.f32 %v1602_v3, %v3530_v51 }
 0x3b4   : > { %1755 = vst [vmem:[%s3535_s12 + $0x110] sm:$0xff] %v1601_v1 }
 0x3b5   : > { %v1833_v58 = vmul.f32 0.5, %v1801_v7  ;;  %v1706_v8 = vsub.f32 %v1603_v33, %v1601_v1  ;;  %1756 = vst [vmem:[%s3535_s12 + $0x118] sm:$0xff] %v1603_v33  ;;  %v1606_v39 = vpop.f32.mrb[68].mxu0 }
 0x3b6   : > { %v1607_v9 = vadd.f32 %v1606_v39, %v3526_v25  ;;  %v1608_v2 = vpop.f32.mrb[69].mxu0 }
 0x3b7   : > { %1865 = vst [vmem:[%s3545_s0 + $0x80] sm:$0xff] %v1833_v58  ;;  %v1802_v45 = vmul.f32 %v1706_v8, %v1706_v8  ;;  %v1609_v20 = vadd.f32 %v1608_v2, %v3530_v51 }
 0x3b8   : > { %1757 = vst [vmem:[%s3535_s12 + $0x120] sm:$0xff] %v1607_v9 }
 0x3b9   : > { %v1834_v26 = vmul.f32 0.5, %v1802_v45  ;;  %v1707_v19 = vsub.f32 %v1609_v20, %v1607_v9  ;;  %1758 = vst [vmem:[%s3535_s12 + $0x128] sm:$0xff] %v1609_v20  ;;  %v1612_v40 = vpop.f32.mrb[70].mxu0 }
 0x3ba   : > { %v1613_v4 = vadd.f32 %v1612_v40, %v3526_v25  ;;  %v1614_v11 = vpop.f32.mrb[71].mxu0 }
 0x3bb   : > { %1866 = vst [vmem:[%s3545_s0 + $0x88] sm:$0xff] %v1834_v26  ;;  %v1803_v13 = vmul.f32 %v1707_v19, %v1707_v19  ;;  %v1615_v63 = vadd.f32 %v1614_v11, %v3530_v51 }
 0x3bc   : > { %1759 = vst [vmem:[%s3535_s12 + $0x130] sm:$0xff] %v1613_v4 }
 0x3bd   : > { %v1835_v24 = vmul.f32 0.5, %v1803_v13  ;;  %v1708_v5 = vsub.f32 %v1615_v63, %v1613_v4  ;;  %1760 = vst [vmem:[%s3535_s12 + $0x138] sm:$0xff] %v1615_v63  ;;  %v1618_v50 = vpop.f32.mrb[72].mxu0 }
 0x3be   : > { %v1619_v16 = vadd.f32 %v1618_v50, %v3526_v25  ;;  %v1620_v48 = vpop.f32.mrb[73].mxu0 }
 0x3bf   : > { %1867 = vst [vmem:[%s3545_s0 + $0x90] sm:$0xff] %v1835_v24  ;;  %v1804_v15 = vmul.f32 %v1708_v5, %v1708_v5  ;;  %v1621_v6 = vadd.f32 %v1620_v48, %v3530_v51 }
 0x3c0   : > { %1761 = vst [vmem:[%s3535_s12 + $0x140] sm:$0xff] %v1619_v16 }
 0x3c1   : > { %v1836_v18 = vmul.f32 0.5, %v1804_v15  ;;  %v1709_v21 = vsub.f32 %v1621_v6, %v1619_v16  ;;  %1762 = vst [vmem:[%s3535_s12 + $0x148] sm:$0xff] %v1621_v6  ;;  %v1624_v27 = vpop.f32.mrb[74].mxu0 }
 0x3c2   : > { %v1625_v17 = vadd.f32 %v1624_v27, %v3526_v25  ;;  %v1626_v35 = vpop.f32.mrb[75].mxu0 }
 0x3c3   : > { %1868 = vst [vmem:[%s3545_s0 + $0x98] sm:$0xff] %v1836_v18  ;;  %v1805_v14 = vmul.f32 %v1709_v21, %v1709_v21  ;;  %v1627_v30 = vadd.f32 %v1626_v35, %v3530_v51 }
 0x3c4   : > { %1763 = vst [vmem:[%s3535_s12 + $0x150] sm:$0xff] %v1625_v17 }
 0x3c5   : > { %v1837_v60 = vmul.f32 0.5, %v1805_v14  ;;  %v1710_v31 = vsub.f32 %v1627_v30, %v1625_v17  ;;  %1764 = vst [vmem:[%s3535_s12 + $0x158] sm:$0xff] %v1627_v30  ;;  %v1630_v29 = vpop.f32.mrb[76].mxu0 }
 0x3c6   : > { %v1631_v34 = vadd.f32 %v1630_v29, %v3526_v25  ;;  %v1632_v62 = vpop.f32.mrb[77].mxu0 }
 0x3c7   : > { %1869 = vst [vmem:[%s3545_s0 + $0xa0] sm:$0xff] %v1837_v60  ;;  %v1806_v36 = vmul.f32 %v1710_v31, %v1710_v31  ;;  %v1633_v38 = vadd.f32 %v1632_v62, %v3530_v51 }
 0x3c8   : > { %1765 = vst [vmem:[%s3535_s12 + $0x160] sm:$0xff] %v1631_v34 }
 0x3c9   : > { %v1838_v41 = vmul.f32 0.5, %v1806_v36  ;;  %v1711_v42 = vsub.f32 %v1633_v38, %v1631_v34  ;;  %1766 = vst [vmem:[%s3535_s12 + $0x168] sm:$0xff] %v1633_v38  ;;  %v1636_v44 = vpop.f32.mrb[78].mxu0 }
 0x3ca   : > { %v1637_v46 = vadd.f32 %v1636_v44, %v3526_v25  ;;  %v1638_v32 = vpop.f32.mrb[79].mxu0 }
 0x3cb   : > { %1870 = vst [vmem:[%s3545_s0 + $0xa8] sm:$0xff] %v1838_v41  ;;  %v1807_v22 = vmul.f32 %v1711_v42, %v1711_v42  ;;  %v1639_v28 = vadd.f32 %v1638_v32, %v3530_v51 }
 0x3cc   : > { %1767 = vst [vmem:[%s3535_s12 + $0x170] sm:$0xff] %v1637_v46 }
 0x3cd   : > { %v1839_v10 = vmul.f32 0.5, %v1807_v22  ;;  %v1712_v49 = vsub.f32 %v1639_v28, %v1637_v46  ;;  %1768 = vst [vmem:[%s3535_s12 + $0x178] sm:$0xff] %v1639_v28  ;;  %v1642_v52 = vpop.f32.mrb[80].mxu0 }
 0x3ce   : > { %v1643_v23 = vadd.f32 %v1642_v52, %v3526_v25  ;;  %v1644_v53 = vpop.f32.mrb[81].mxu0 }
 0x3cf   : > { %1871 = vst [vmem:[%s3545_s0 + $0xb0] sm:$0xff] %v1839_v10  ;;  %v1808_v47 = vmul.f32 %v1712_v49, %v1712_v49  ;;  %v1645_v55 = vadd.f32 %v1644_v53, %v3530_v51 }
 0x3d0   : > { %1769 = vst [vmem:[%s3535_s12 + $0x180] sm:$0xff] %v1643_v23 }
 0x3d1   : > { %v1840_v54 = vmul.f32 0.5, %v1808_v47  ;;  %v1713_v61 = vsub.f32 %v1645_v55, %v1643_v23  ;;  %1770 = vst [vmem:[%s3535_s12 + $0x188] sm:$0xff] %v1645_v55  ;;  %v1648_v56 = vpop.f32.mrb[82].mxu0 }
 0x3d2   : > { %v1649_v43 = vadd.f32 %v1648_v56, %v3526_v25  ;;  %v1650_v59 = vpop.f32.mrb[83].mxu0 }
 0x3d3   : > { %1872 = vst [vmem:[%s3545_s0 + $0xb8] sm:$0xff] %v1840_v54  ;;  %v1809_v0 = vmul.f32 %v1713_v61, %v1713_v61  ;;  %v1651_v37 = vadd.f32 %v1650_v59, %v3530_v51 }
 0x3d4   : > { %1771 = vst [vmem:[%s3535_s12 + $0x190] sm:$0xff] %v1649_v43 }
 0x3d5   : > { %v1841_v57 = vmul.f32 0.5, %v1809_v0  ;;  %v1714_v12 = vsub.f32 %v1651_v37, %v1649_v43  ;;  %1772 = vst [vmem:[%s3535_s12 + $0x198] sm:$0xff] %v1651_v37  ;;  %v1654_v1 = vpop.f32.mrb[84].mxu0 }
 0x3d6   : > { %v1655_v3 = vadd.f32 %v1654_v1, %v3526_v25  ;;  %v1656_v7 = vpop.f32.mrb[85].mxu0 }
 0x3d7   : > { %1873 = vst [vmem:[%s3545_s0 + $0xc0] sm:$0xff] %v1841_v57  ;;  %v1810_v33 = vmul.f32 %v1714_v12, %v1714_v12  ;;  %v1657_v58 = vadd.f32 %v1656_v7, %v3530_v51 }
 0x3d8   : > { %1773 = vst [vmem:[%s3535_s12 + $0x1a0] sm:$0xff] %v1655_v3 }
 0x3d9   : > { %v1842_v8 = vmul.f32 0.5, %v1810_v33  ;;  %v1715_v39 = vsub.f32 %v1657_v58, %v1655_v3  ;;  %1774 = vst [vmem:[%s3535_s12 + $0x1a8] sm:$0xff] %v1657_v58  ;;  %v1660_v9 = vpop.f32.mrb[86].mxu0 }
 0x3da   : > { %v1661_v2 = vadd.f32 %v1660_v9, %v3526_v25  ;;  %v1662_v45 = vpop.f32.mrb[87].mxu0 }
 0x3db   : > { %1874 = vst [vmem:[%s3545_s0 + $0xc8] sm:$0xff] %v1842_v8  ;;  %v1811_v20 = vmul.f32 %v1715_v39, %v1715_v39  ;;  %v1663_v26 = vadd.f32 %v1662_v45, %v3530_v51 }
 0x3dc   : > { %1775 = vst [vmem:[%s3535_s12 + $0x1b0] sm:$0xff] %v1661_v2 }
 0x3dd   : > { %v1843_v19 = vmul.f32 0.5, %v1811_v20  ;;  %v1716_v40 = vsub.f32 %v1663_v26, %v1661_v2  ;;  %1776 = vst [vmem:[%s3535_s12 + $0x1b8] sm:$0xff] %v1663_v26  ;;  %v1666_v4 = vpop.f32.mrb[88].mxu0 }
 0x3de   : > { %v1667_v11 = vadd.f32 %v1666_v4, %v3526_v25  ;;  %v1668_v13 = vpop.f32.mrb[89].mxu0 }
 0x3df   : > { %1875 = vst [vmem:[%s3545_s0 + $0xd0] sm:$0xff] %v1843_v19  ;;  %v1812_v63 = vmul.f32 %v1716_v40, %v1716_v40  ;;  %v1669_v24 = vadd.f32 %v1668_v13, %v3530_v51 }
 0x3e0   : > { %1777 = vst [vmem:[%s3535_s12 + $0x1c0] sm:$0xff] %v1667_v11 }
 0x3e1   : > { %v1844_v5 = vmul.f32 0.5, %v1812_v63  ;;  %v1717_v50 = vsub.f32 %v1669_v24, %v1667_v11  ;;  %1778 = vst [vmem:[%s3535_s12 + $0x1c8] sm:$0xff] %v1669_v24  ;;  %v1672_v16 = vpop.f32.mrb[90].mxu0 }
 0x3e2   : > { %v1673_v48 = vadd.f32 %v1672_v16, %v3526_v25  ;;  %v1674_v15 = vpop.f32.mrb[91].mxu0 }
 0x3e3   : > { %1876 = vst [vmem:[%s3545_s0 + $0xd8] sm:$0xff] %v1844_v5  ;;  %v1813_v6 = vmul.f32 %v1717_v50, %v1717_v50  ;;  %v1675_v18 = vadd.f32 %v1674_v15, %v3530_v51 }
 0x3e4   : > { %1779 = vst [vmem:[%s3535_s12 + $0x1d0] sm:$0xff] %v1673_v48 }
 0x3e5   : > { %v1845_v21 = vmul.f32 0.5, %v1813_v6  ;;  %v1718_v27 = vsub.f32 %v1675_v18, %v1673_v48  ;;  %1780 = vst [vmem:[%s3535_s12 + $0x1d8] sm:$0xff] %v1675_v18  ;;  %v1678_v17 = vpop.f32.mrb[92].mxu0 }
 0x3e6   : > { %v1679_v35 = vadd.f32 %v1678_v17, %v3526_v25  ;;  %v1680_v14 = vpop.f32.mrb[93].mxu0 }
 0x3e7   : > { %1877 = vst [vmem:[%s3545_s0 + $0xe0] sm:$0xff] %v1845_v21  ;;  %v1814_v30 = vmul.f32 %v1718_v27, %v1718_v27  ;;  %v1681_v60 = vadd.f32 %v1680_v14, %v3530_v51 }
 0x3e8   : > { %1781 = vst [vmem:[%s3535_s12 + $0x1e0] sm:$0xff] %v1679_v35 }
 0x3e9   : > { %v1846_v31 = vmul.f32 0.5, %v1814_v30  ;;  %v1719_v29 = vsub.f32 %v1681_v60, %v1679_v35  ;;  %1782 = vst [vmem:[%s3535_s12 + $0x1e8] sm:$0xff] %v1681_v60  ;;  %v1684_v34 = vpop.f32.mrb[94].mxu0 }
 0x3ea   : > { %v1685_v62 = vadd.f32 %v1684_v34, %v3526_v25  ;;  %v1686_v36 = vpop.f32.mrb[95].mxu0 }
 0x3eb   : > { %1878 = vst [vmem:[%s3545_s0 + $0xe8] sm:$0xff] %v1846_v31  ;;  %v1815_v38 = vmul.f32 %v1719_v29, %v1719_v29  ;;  %v1687_v41 = vadd.f32 %v1686_v36, %v3530_v51 }
 0x3ec   : > { %1783 = vst [vmem:[%s3535_s12 + $0x1f0] sm:$0xff] %v1685_v62 }
 0x3ed   : > { %v1847_v42 = vmul.f32 0.5, %v1815_v38  ;;  %v1720_v44 = vsub.f32 %v1687_v41, %v1685_v62  ;;  %1784 = vst [vmem:[%s3535_s12 + $0x1f8] sm:$0xff] %v1687_v41 }
 0x3ee   : > { %2561 = shalt.err (!%p2558_p2)
}
 0x3ef   : > { %s2562_s11 = scalar_lea.hbm %s3697_s18, 8192  ;;  %s2566_s9 = scalar_lea.hbm %s3795_s5, 24576 }
 0x3f0   : > { %p2563_p7 = scmp.ne.s32.totalorder %s3697_s18, %s2562_s11  ;;  %p2567_p3 = scmp.lt.u32.totalorder %s3697_s18, %s3795_s5 }
 0x3f1   : > { %p2568_p8 = scmp.lt.u32.totalorder %s2566_s9, %s2562_s11  ;;  %p2570_p1 = scmp.lt.u32.totalorder %s2562_s11, %s3697_s18 }
 0x3f2   : > { %p2564_p9 = pnand %p2563_p7, %p3837_p10 }
 0x3f3   : > { %p2569_p13 = por %p2568_p8, %p2567_p3 }
 0x3f4   : > { %p2565_p0 = pneg %p2564_p9 }
 0x3f5   : > { %p2571_p12 = por %p2570_p1, %p2569_p13 }
 0x3f7   : > { %p2572_p11 = pnand %p2571_p12, %p2565_p0 }
 0x3f9   : > { %2575 = shalt.err (!%p2572_p11)
}
 0x3fa   : > { %s2683_s17 = smov 256   ;;  %s2684_s12 = smov 16   ;;  %1879 = vst [vmem:[%s3545_s0 + $0xf0] sm:$0xff] %v1847_v42  ;;  %v1816_v25 = vmul.f32 %v1720_v44, %v1720_v44 }
 0x3fb   : > { %2344 = dma.vmem_to_hbm [thread:$0]  (%p3837_p10), %s3699_s30, 8192, %s3697_s18, %s1882_s2, %s2683_s17, %s2683_s17, %s2684_s12  }
 0x3fc   : > { %s3737_s8 = scalar_lea.hbm %s3796_s6, %s2158_s16  ;;  %v1848_v51 = vmul.f32 0.5, %v1816_v25  ;;  %s1887_s13 = scalar_lea.sflag [#allocation12], %s2970_s21 }
 0x3fd   : > { %s2576_s28 = scalar_lea.vmem %s3741_s23, 4096  ;;  %s2685_s24 = smov [#allocation11]  }
 0x3fe   : > { %1880 = vst [vmem:[%s3545_s0 + $0xf8] sm:$0xff] %v1848_v51  ;;  %p2577_p5 = scmp.ne.s32.totalorder %s3741_s23, %s2576_s28  ;;  %s2580_s30 = sshll.u32 %s2685_s24, 4  ;;  %s2581_s30 = int_to_ptr.vmem [resolvable:$false] %s2580_s30 }
 0x3ff   : > { %s2582_s18 = scalar_lea.vmem %s2581_s30, 8192  ;;  %p2583_p2 = scmp.lt.s32.totalorder %s3741_s23, %s2581_s30 }
 0x400   : > { %p2578_p4 = pnand %p2577_p5, %p3837_p10  ;;  %p2584_p7 = scmp.lt.s32.totalorder %s2582_s18, %s2576_s28 }
 0x402   : > { %p2579_p6 = pneg %p2578_p4  ;;  %p2585_p9 = por %p2584_p7, %p2583_p2 }
 0x404   : > { %p2586_p0 = pnand %p2585_p9, %p2579_p6 }
 0x406   : > { %2589 = shalt.err (!%p2586_p0)
}
 0x407   : > { %s2590_s0 = scalar_lea.hbm %s3737_s8, 4096  ;;  %s2594_s15 = scalar_lea.hbm %s3796_s6, 12288 }
 0x408   : > { %p2591_p3 = scmp.ne.s32.totalorder %s3737_s8, %s2590_s0  ;;  %p2595_p1 = scmp.lt.u32.totalorder %s3737_s8, %s3796_s6 }
 0x409   : > { %p2596_p12 = scmp.lt.u32.totalorder %s2594_s15, %s2590_s0  ;;  %p2598_p5 = scmp.lt.u32.totalorder %s2590_s0, %s3737_s8 }
 0x40a   : > { %p2592_p8 = pnand %p2591_p3, %p3837_p10 }
 0x40b   : > { %p2597_p11 = por %p2596_p12, %p2595_p1 }
 0x40c   : > { %p2593_p13 = pneg %p2592_p8 }
 0x40d   : > { %p2599_p4 = por %p2598_p5, %p2597_p11 }
 0x40f   : > { %p2600_p6 = pnand %p2599_p4, %p2593_p13 }
 0x411   : > { %2603 = shalt.err (!%p2600_p6)
}
 0x412   : > { %s2686_s20 = smov 128   ;;  %s2687_s27 = smov 8  }
 0x413   : > { %2345 = dma.vmem_to_hbm [thread:$0]  (%p3837_p10), %s3741_s23, 4096, %s3737_s8, %s1887_s13, %s2686_s20, %s2686_s20, %s2687_s27  }
 0x414 PF: > { %s3838_s9 = sld [smem:[#allocation18_spill]]  ;;  %s3839_s7 = sld [smem:[#allocation22_spill]] }
 0x415   : > { %p2369_p2 = scmp.ge.s32.totalorder %s2670_s26, 2 }
 0x41a   : > { %s1936_s1 = sand.u32 1, %s3838_s9   ;;  %p3840_p7 = scmp.ne.s32.totalorder %s3839_s7, 0 }
 0x41b   : > { %s1937_s17 = scalar_lea.sflag [#allocation4], %s1936_s1 }
 0x41c   : > { %p2362_p9 = pnand %p2369_p2, %p3840_p7 }
 0x41e   : > { %2641 = dma.done.wait (!%p2362_p9), %s1937_s17, 8192  }
 0x41f   : > { %2643 = vsyncadd (!%p2362_p9), %s1937_s17, 4294959104  ;;  %s1946_s12 = scalar_lea.sflag [#allocation12], %s1936_s1 }
 0x420   : > { %2645 = dma.done.wait (!%p2362_p9), %s1946_s12, 4096  }
 0x421   : > { %2647 = vsyncadd (!%p2362_p9), %s1946_s12, 4294963200  ;;  %s32_s26 = sadd.s32 1, %s2670_s26   ;;  %s3841_s10 = sld [smem:[#allocation19_spill]] }
 0x422   : > { %p29_p0 = scmp.ge.s32.totalorder %s32_s26, 5   ;;  %s3842_s23 = sld [smem:[#allocation21_spill]] }
 0x423   : > { %s3843_s29 = sld [smem:[#allocation20_spill]]  ;;  %s3844_s21 = smov %s2654_s22 }
 0x424   : > { %s3846_s24 = smov %s2666_s25  ;;  %31 = sbr.rel (!%p29_p0) target bundleno = 16 (0x10), region = 142 }
 0x427   : > { %s3845_s22 = smov %s3841_s10 }
 0x429   : > { %s3847_s25 = smov %s3843_s29 }
 0x42b   :  { %1951 = vsyncpa [#allocation3], 1 }
 0x42c   :  { %1953 = vsyncpa [#allocation3 + $0x1], 1 }
 0x42d   :  { %1954 = vsyncpa [#allocation6], 1 }
 0x42e   :  { %1956 = vsyncpa [#allocation6 + $0x1], 1 }
 0x42f   :  { %1957 = vsyncpa [#allocation9], 1 }
 0x430   :  { %1959 = vsyncpa [#allocation9 + $0x1], 1 }
 0x431   :  { %1960 = vsyncpa [#allocation4], 1 }
 0x432   :  { %1962 = vsyncpa [#allocation4 + $0x1], 1 }
 0x433   :  { %1963 = vsyncpa [#allocation12], 1 }
 0x434   :  { %1965 = vsyncpa [#allocation12 + $0x1], 1 }

</bundles_post_ra>
